<compile_context>
chip_gen: v5e
topology: v5e:2x2
jax: 0.10.0
libtpu: 0.0.40
codegen_flags: <defaults>
</compile_context>

<pallas_src>
import functools

import jax
import jax.numpy as jnp
from jax import lax
from jax.experimental import pallas as pl
from jax.experimental.pallas import tpu as pltpu

# Layer widths from the module: enter -> 30 -> 128 -> 256 -> 256 -> 128 -> 100 -> 25 -> 1
LAYER_SIZES = [30, 128, 256, 256, 128, 100, 25, 1]
LANE = 128


def _round_up(n, m):
    return (n + m - 1) // m * m


# Lane-aligned (padded) layer widths used inside the kernel.
PAD_SIZES = [_round_up(s, LANE) for s in LAYER_SIZES]  # [128,128,256,256,128,128,128,128]


def mlp_kernel(x_ref,
               w1, b1, w2, b2, w3, b3, w4, b4,
               w5, b5, w6, b6, w7, b7, w8, b8,
               o_ref):
    """One batch tile of the whole MLP; all weights/biases are VMEM-resident."""
    h = x_ref[...]                                            # (tb, enter) f32
    for w_ref, b_ref in ((w1, b1), (w2, b2), (w3, b3), (w4, b4),
                         (w5, b5), (w6, b6), (w7, b7)):
        # bf16 x bf16 on the MXU, f32 accumulation; bias-add + ReLU in f32.
        acc = jnp.dot(h.astype(jnp.bfloat16), w_ref[...],
                      preferred_element_type=jnp.float32)
        h = jnp.maximum(acc + b_ref[...], 0.0)

    # Head: w8/b8 have the single real output column replicated across all 128
    # lanes, so every lane of z holds that row's head pre-activation.
    z = jnp.dot(h.astype(jnp.bfloat16), w8[...],
                preferred_element_type=jnp.float32) + b8[...]  # (tb, 128)

    # Compact lane-dense output: batch row (g*128 + n) of this tile -> o_ref[g, n].
    # Since all lanes of a row are identical, that value is the diagonal element
    # of the g-th 128x128 block of z; extract it with a masked sublane reduction
    # (column sums of diag*block), which lands lane-dense with no relayout.
    sub = lax.broadcasted_iota(jnp.int32, (LANE, LANE), 0)
    ln = lax.broadcasted_iota(jnp.int32, (LANE, LANE), 1)
    diag = sub == ln
    g_blocks = o_ref.shape[0]                                  # tb // 128 (static)
    for g in range(g_blocks):
        blk = z[g * LANE:(g + 1) * LANE, :]                    # (128, 128) static slice
        row = jnp.sum(jnp.where(diag, blk, 0.0), axis=0, keepdims=True)  # (1, 128)
        o_ref[g:g + 1, :] = jax.nn.sigmoid(row)                # sigmoid only on real outputs


def init_params(key, enter):
    """Deterministic PyTorch-style init: U(-1/sqrt(fan_in), 1/sqrt(fan_in))."""
    params = []
    in_dim = enter
    for out_dim in LAYER_SIZES:
        key, kw, kb = jax.random.split(key, 3)
        bound = 1.0 / jnp.sqrt(jnp.float32(in_dim))
        w = jax.random.uniform(kw, (in_dim, out_dim), jnp.float32, -bound, bound)
        b = jax.random.uniform(kb, (1, out_dim), jnp.float32, -bound, bound)
        params.append((w, b))
        in_dim = out_dim
    return params


def pad_params(params, enter):
    """Zero-pad to lane-aligned widths; bf16 weights, f32 biases.

    The head layer's single real output column (and bias) is replicated across
    all 128 lanes so the kernel can emit a compact lane-dense output.
    """
    padded = []
    in_pads = [enter] + PAD_SIZES[:-1]
    n_layers = len(params)
    for idx, ((w, b), in_pad, out_pad) in enumerate(zip(params, in_pads, PAD_SIZES)):
        wi, wo = w.shape
        if idx == n_layers - 1:
            w_col = jnp.zeros((in_pad, 1), jnp.float32).at[:wi, :].set(w)
            w_p = jnp.tile(w_col, (1, out_pad))                # replicate head column
            b_p = jnp.tile(b.astype(jnp.float32), (1, out_pad))
        else:
            w_p = jnp.zeros((in_pad, out_pad), jnp.float32).at[:wi, :wo].set(w)
            b_p = jnp.zeros((1, out_pad), jnp.float32).at[:, :wo].set(b)
        padded.append((w_p.astype(jnp.bfloat16), b_p))         # weights bf16, biases f32
    return padded


@functools.partial(jax.jit, static_argnames=("tb_max",))
def net_forward(x, padded_flat, tb_max=2048):
    batch, enter = x.shape
    b128 = _round_up(batch, LANE)
    if b128 <= 1024:
        # Single tile: compact out block equals the full output array (always legal).
        tb = b128
    else:
        # >=2 tiles so v7x's two TensorCores both get work; tb a multiple of 1024
        # keeps the compact output block (tb//128, 128) sublane-aligned (G % 8 == 0).
        tb = min(_round_up(tb_max, 1024), _round_up(pl.cdiv(b128, 2), 1024))
    padded_batch = _round_up(b128, tb)
    if padded_batch != batch:
        x = jnp.pad(x, ((0, padded_batch - batch), (0, 0)))
    num_tiles = padded_batch // tb
    g_blocks = tb // LANE
    total_g = padded_batch // LANE

    # x tile follows the grid; every weight/bias is a full-array block with a
    # constant index_map -> DMA'd once and VMEM-resident across all batch tiles.
    # (Pallas skips the re-DMA on revisit; the extra default buffer is ~0.4 MB.)
    in_specs = [pl.BlockSpec((tb, enter), lambda i: (i, 0))]
    for arr in padded_flat:
        in_specs.append(pl.BlockSpec(arr.shape, lambda i: (0, 0)))

    in_pads = [enter] + PAD_SIZES[:-1]
    flops = 2 * padded_batch * sum(k * n for k, n in zip(in_pads, PAD_SIZES))
    weight_bytes = sum(int(a.size) * a.dtype.itemsize for a in padded_flat)
    bytes_accessed = int(x.size) * 4 + padded_batch * 4 + weight_bytes

    out = pl.pallas_call(
        mlp_kernel,
        out_shape=jax.ShapeDtypeStruct((total_g, LANE), jnp.float32),
        grid=(num_tiles,),
        in_specs=in_specs,
        out_specs=pl.BlockSpec((g_blocks, LANE), lambda i: (i, 0)),
        compiler_params=pltpu.CompilerParams(
            dimension_semantics=("parallel",),       # shards batch tiles on v7x's 2 TCs
            vmem_limit_bytes=48 * 1024 * 1024,       # > v5e default scoped, < v7x physical
        ),
        cost_estimate=pl.CostEstimate(
            flops=flops,
            transcendentals=padded_batch,
            bytes_accessed=bytes_accessed,
        ),
    )(x, *padded_flat)

    # out[t, n] holds batch row t*128 + n; row-major reshape undoes the packing.
    return out.reshape(padded_batch, 1)[:batch]


def net_forward_ref(x, params):
    h = x
    for i, (w, b) in enumerate(params):
        h = h @ w + b
        if i < len(params) - 1:
            h = jnp.maximum(h, 0.0)
    return jax.nn.sigmoid(h)


if __name__ == "__main__":
    key = jax.random.PRNGKey(0)
    key, kx = jax.random.split(key)

    batch, enter = 8, 16
    x = jax.random.normal(kx, (batch, enter), jnp.float32)

    params = init_params(key, enter)
    padded = pad_params(params, enter)
    padded_flat = [t for wb in padded for t in wb]

    out = jax.block_until_ready(net_forward(x, padded_flat))
    ref = net_forward_ref(x, params)

    assert out.shape == (batch, 1), out.shape
    max_err = float(jnp.max(jnp.abs(out - ref)))
    # bf16 weights/activations (f32 accumulate) -> loosened tolerance vs f32 reference.
    assert jnp.allclose(out, ref, atol=2e-2), f"mismatch vs reference, max abs err {max_err:.3g}"

    print("KERNEL_OK")
</pallas_src>

<mosaic_0001>
module attributes {stable_mosaic.version = 11 : i64} {
  func.func @mlp_kernel(%arg0: i32, %arg1: memref<128x16xf32, #tpu.memory_space<vmem>>, %arg2: memref<16x128xbf16, #tpu.memory_space<vmem>>, %arg3: memref<1x128xf32, #tpu.memory_space<vmem>>, %arg4: memref<128x128xbf16, #tpu.memory_space<vmem>>, %arg5: memref<1x128xf32, #tpu.memory_space<vmem>>, %arg6: memref<128x256xbf16, #tpu.memory_space<vmem>>, %arg7: memref<1x256xf32, #tpu.memory_space<vmem>>, %arg8: memref<256x256xbf16, #tpu.memory_space<vmem>>, %arg9: memref<1x256xf32, #tpu.memory_space<vmem>>, %arg10: memref<256x128xbf16, #tpu.memory_space<vmem>>, %arg11: memref<1x128xf32, #tpu.memory_space<vmem>>, %arg12: memref<128x128xbf16, #tpu.memory_space<vmem>>, %arg13: memref<1x128xf32, #tpu.memory_space<vmem>>, %arg14: memref<128x128xbf16, #tpu.memory_space<vmem>>, %arg15: memref<1x128xf32, #tpu.memory_space<vmem>>, %arg16: memref<128x128xbf16, #tpu.memory_space<vmem>>, %arg17: memref<1x128xf32, #tpu.memory_space<vmem>>, %arg18: memref<1x128xf32, #tpu.memory_space<vmem>>) attributes {dimension_semantics = [#tpu.dimension_semantics<parallel>], iteration_bounds = array<i64: 1>, scalar_prefetch = 0 : i64, scratch_operands = 0 : i64, tpu.core_type = #tpu.core_type<tc>, window_params = [{transform_indices = @transform_0, window_bounds = array<i64: 128, 16>}, {pipeline_mode = #tpu.pipeline_mode<synchronous>, transform_indices = @transform_1, window_bounds = array<i64: 16, 128>}, {pipeline_mode = #tpu.pipeline_mode<synchronous>, transform_indices = @transform_2, window_bounds = array<i64: 1, 128>}, {pipeline_mode = #tpu.pipeline_mode<synchronous>, transform_indices = @transform_3, window_bounds = array<i64: 128, 128>}, {pipeline_mode = #tpu.pipeline_mode<synchronous>, transform_indices = @transform_4, window_bounds = array<i64: 1, 128>}, {pipeline_mode = #tpu.pipeline_mode<synchronous>, transform_indices = @transform_5, window_bounds = array<i64: 128, 256>}, {pipeline_mode = #tpu.pipeline_mode<synchronous>, transform_indices = @transform_6, window_bounds = array<i64: 1, 256>}, {pipeline_mode = #tpu.pipeline_mode<synchronous>, transform_indices = @transform_7, window_bounds = array<i64: 256, 256>}, {pipeline_mode = #tpu.pipeline_mode<synchronous>, transform_indices = @transform_8, window_bounds = array<i64: 1, 256>}, {pipeline_mode = #tpu.pipeline_mode<synchronous>, transform_indices = @transform_9, window_bounds = array<i64: 256, 128>}, {pipeline_mode = #tpu.pipeline_mode<synchronous>, transform_indices = @transform_10, window_bounds = array<i64: 1, 128>}, {pipeline_mode = #tpu.pipeline_mode<synchronous>, transform_indices = @transform_11, window_bounds = array<i64: 128, 128>}, {pipeline_mode = #tpu.pipeline_mode<synchronous>, transform_indices = @transform_12, window_bounds = array<i64: 1, 128>}, {pipeline_mode = #tpu.pipeline_mode<synchronous>, transform_indices = @transform_13, window_bounds = array<i64: 128, 128>}, {pipeline_mode = #tpu.pipeline_mode<synchronous>, transform_indices = @transform_14, window_bounds = array<i64: 1, 128>}, {pipeline_mode = #tpu.pipeline_mode<synchronous>, transform_indices = @transform_15, window_bounds = array<i64: 128, 128>}, {pipeline_mode = #tpu.pipeline_mode<synchronous>, transform_indices = @transform_16, window_bounds = array<i64: 1, 128>}, {transform_indices = @transform_17, window_bounds = array<i64: 1, 128>}]} {
    %c0 = arith.constant 0 : index
    %c0_0 = arith.constant 0 : index
    %0 = vector.load %arg1[%c0, %c0_0] : memref<128x16xf32, #tpu.memory_space<vmem>>, vector<128x16xf32>
    %1 = arith.truncf %0 : vector<128x16xf32> to vector<128x16xbf16>
    %c0_1 = arith.constant 0 : index
    %c0_2 = arith.constant 0 : index
    %2 = vector.load %arg2[%c0_1, %c0_2] : memref<16x128xbf16, #tpu.memory_space<vmem>>, vector<16x128xbf16>
    %cst = arith.constant dense<0.000000e+00> : vector<128x128xf32>
    %3 = tpu.matmul %1, %2, %cst {dimension_numbers = #tpu.dot_dimension_numbers<[1], [0], [0], [1], [0, 0, 1, 1], [], []>} : vector<128x16xbf16>, vector<16x128xbf16>, vector<128x128xf32> -> vector<128x128xf32>
    %c0_3 = arith.constant 0 : index
    %c0_4 = arith.constant 0 : index
    %4 = vector.load %arg3[%c0_3, %c0_4] : memref<1x128xf32, #tpu.memory_space<vmem>>, vector<1x128xf32>
    %5 = vector.broadcast %4 : vector<1x128xf32> to vector<128x128xf32>
    %6 = arith.addf %3, %5 : vector<128x128xf32>
    %cst_5 = arith.constant 0.000000e+00 : f32
    %7 = vector.broadcast %cst_5 : f32 to vector<128x128xf32>
    %8 = arith.maximumf %6, %7 : vector<128x128xf32>
    %9 = arith.truncf %8 : vector<128x128xf32> to vector<128x128xbf16>
    %c0_6 = arith.constant 0 : index
    %c0_7 = arith.constant 0 : index
    %10 = vector.load %arg4[%c0_6, %c0_7] : memref<128x128xbf16, #tpu.memory_space<vmem>>, vector<128x128xbf16>
    %cst_8 = arith.constant dense<0.000000e+00> : vector<128x128xf32>
    %11 = tpu.matmul %9, %10, %cst_8 {dimension_numbers = #tpu.dot_dimension_numbers<[1], [0], [0], [1], [0, 0, 1, 1], [], []>} : vector<128x128xbf16>, vector<128x128xbf16>, vector<128x128xf32> -> vector<128x128xf32>
    %c0_9 = arith.constant 0 : index
    %c0_10 = arith.constant 0 : index
    %12 = vector.load %arg5[%c0_9, %c0_10] : memref<1x128xf32, #tpu.memory_space<vmem>>, vector<1x128xf32>
    %13 = vector.broadcast %12 : vector<1x128xf32> to vector<128x128xf32>
    %14 = arith.addf %11, %13 : vector<128x128xf32>
    %cst_11 = arith.constant 0.000000e+00 : f32
    %15 = vector.broadcast %cst_11 : f32 to vector<128x128xf32>
    %16 = arith.maximumf %14, %15 : vector<128x128xf32>
    %17 = arith.truncf %16 : vector<128x128xf32> to vector<128x128xbf16>
    %c0_12 = arith.constant 0 : index
    %c0_13 = arith.constant 0 : index
    %18 = vector.load %arg6[%c0_12, %c0_13] : memref<128x256xbf16, #tpu.memory_space<vmem>>, vector<128x256xbf16>
    %cst_14 = arith.constant dense<0.000000e+00> : vector<128x256xf32>
    %19 = tpu.matmul %17, %18, %cst_14 {dimension_numbers = #tpu.dot_dimension_numbers<[1], [0], [0], [1], [0, 0, 1, 1], [], []>} : vector<128x128xbf16>, vector<128x256xbf16>, vector<128x256xf32> -> vector<128x256xf32>
    %c0_15 = arith.constant 0 : index
    %c0_16 = arith.constant 0 : index
    %20 = vector.load %arg7[%c0_15, %c0_16] : memref<1x256xf32, #tpu.memory_space<vmem>>, vector<1x256xf32>
    %21 = vector.broadcast %20 : vector<1x256xf32> to vector<128x256xf32>
    %22 = arith.addf %19, %21 : vector<128x256xf32>
    %cst_17 = arith.constant 0.000000e+00 : f32
    %23 = vector.broadcast %cst_17 : f32 to vector<128x256xf32>
    %24 = arith.maximumf %22, %23 : vector<128x256xf32>
    %25 = arith.truncf %24 : vector<128x256xf32> to vector<128x256xbf16>
    %c0_18 = arith.constant 0 : index
    %c0_19 = arith.constant 0 : index
    %26 = vector.load %arg8[%c0_18, %c0_19] : memref<256x256xbf16, #tpu.memory_space<vmem>>, vector<256x256xbf16>
    %cst_20 = arith.constant dense<0.000000e+00> : vector<128x256xf32>
    %27 = tpu.matmul %25, %26, %cst_20 {dimension_numbers = #tpu.dot_dimension_numbers<[1], [0], [0], [1], [0, 0, 1, 1], [], []>} : vector<128x256xbf16>, vector<256x256xbf16>, vector<128x256xf32> -> vector<128x256xf32>
    %c0_21 = arith.constant 0 : index
    %c0_22 = arith.constant 0 : index
    %28 = vector.load %arg9[%c0_21, %c0_22] : memref<1x256xf32, #tpu.memory_space<vmem>>, vector<1x256xf32>
    %29 = vector.broadcast %28 : vector<1x256xf32> to vector<128x256xf32>
    %30 = arith.addf %27, %29 : vector<128x256xf32>
    %cst_23 = arith.constant 0.000000e+00 : f32
    %31 = vector.broadcast %cst_23 : f32 to vector<128x256xf32>
    %32 = arith.maximumf %30, %31 : vector<128x256xf32>
    %33 = arith.truncf %32 : vector<128x256xf32> to vector<128x256xbf16>
    %c0_24 = arith.constant 0 : index
    %c0_25 = arith.constant 0 : index
    %34 = vector.load %arg10[%c0_24, %c0_25] : memref<256x128xbf16, #tpu.memory_space<vmem>>, vector<256x128xbf16>
    %cst_26 = arith.constant dense<0.000000e+00> : vector<128x128xf32>
    %35 = tpu.matmul %33, %34, %cst_26 {dimension_numbers = #tpu.dot_dimension_numbers<[1], [0], [0], [1], [0, 0, 1, 1], [], []>} : vector<128x256xbf16>, vector<256x128xbf16>, vector<128x128xf32> -> vector<128x128xf32>
    %c0_27 = arith.constant 0 : index
    %c0_28 = arith.constant 0 : index
    %36 = vector.load %arg11[%c0_27, %c0_28] : memref<1x128xf32, #tpu.memory_space<vmem>>, vector<1x128xf32>
    %37 = vector.broadcast %36 : vector<1x128xf32> to vector<128x128xf32>
    %38 = arith.addf %35, %37 : vector<128x128xf32>
    %cst_29 = arith.constant 0.000000e+00 : f32
    %39 = vector.broadcast %cst_29 : f32 to vector<128x128xf32>
    %40 = arith.maximumf %38, %39 : vector<128x128xf32>
    %41 = arith.truncf %40 : vector<128x128xf32> to vector<128x128xbf16>
    %c0_30 = arith.constant 0 : index
    %c0_31 = arith.constant 0 : index
    %42 = vector.load %arg12[%c0_30, %c0_31] : memref<128x128xbf16, #tpu.memory_space<vmem>>, vector<128x128xbf16>
    %cst_32 = arith.constant dense<0.000000e+00> : vector<128x128xf32>
    %43 = tpu.matmul %41, %42, %cst_32 {dimension_numbers = #tpu.dot_dimension_numbers<[1], [0], [0], [1], [0, 0, 1, 1], [], []>} : vector<128x128xbf16>, vector<128x128xbf16>, vector<128x128xf32> -> vector<128x128xf32>
    %c0_33 = arith.constant 0 : index
    %c0_34 = arith.constant 0 : index
    %44 = vector.load %arg13[%c0_33, %c0_34] : memref<1x128xf32, #tpu.memory_space<vmem>>, vector<1x128xf32>
    %45 = vector.broadcast %44 : vector<1x128xf32> to vector<128x128xf32>
    %46 = arith.addf %43, %45 : vector<128x128xf32>
    %cst_35 = arith.constant 0.000000e+00 : f32
    %47 = vector.broadcast %cst_35 : f32 to vector<128x128xf32>
    %48 = arith.maximumf %46, %47 : vector<128x128xf32>
    %49 = arith.truncf %48 : vector<128x128xf32> to vector<128x128xbf16>
    %c0_36 = arith.constant 0 : index
    %c0_37 = arith.constant 0 : index
    %50 = vector.load %arg14[%c0_36, %c0_37] : memref<128x128xbf16, #tpu.memory_space<vmem>>, vector<128x128xbf16>
    %cst_38 = arith.constant dense<0.000000e+00> : vector<128x128xf32>
    %51 = tpu.matmul %49, %50, %cst_38 {dimension_numbers = #tpu.dot_dimension_numbers<[1], [0], [0], [1], [0, 0, 1, 1], [], []>} : vector<128x128xbf16>, vector<128x128xbf16>, vector<128x128xf32> -> vector<128x128xf32>
    %c0_39 = arith.constant 0 : index
    %c0_40 = arith.constant 0 : index
    %52 = vector.load %arg15[%c0_39, %c0_40] : memref<1x128xf32, #tpu.memory_space<vmem>>, vector<1x128xf32>
    %53 = vector.broadcast %52 : vector<1x128xf32> to vector<128x128xf32>
    %54 = arith.addf %51, %53 : vector<128x128xf32>
    %cst_41 = arith.constant 0.000000e+00 : f32
    %55 = vector.broadcast %cst_41 : f32 to vector<128x128xf32>
    %56 = arith.maximumf %54, %55 : vector<128x128xf32>
    %57 = arith.truncf %56 : vector<128x128xf32> to vector<128x128xbf16>
    %c0_42 = arith.constant 0 : index
    %c0_43 = arith.constant 0 : index
    %58 = vector.load %arg16[%c0_42, %c0_43] : memref<128x128xbf16, #tpu.memory_space<vmem>>, vector<128x128xbf16>
    %cst_44 = arith.constant dense<0.000000e+00> : vector<128x128xf32>
    %59 = tpu.matmul %57, %58, %cst_44 {dimension_numbers = #tpu.dot_dimension_numbers<[1], [0], [0], [1], [0, 0, 1, 1], [], []>} : vector<128x128xbf16>, vector<128x128xbf16>, vector<128x128xf32> -> vector<128x128xf32>
    %c0_45 = arith.constant 0 : index
    %c0_46 = arith.constant 0 : index
    %60 = vector.load %arg17[%c0_45, %c0_46] : memref<1x128xf32, #tpu.memory_space<vmem>>, vector<1x128xf32>
    %61 = vector.broadcast %60 : vector<1x128xf32> to vector<128x128xf32>
    %62 = arith.addf %59, %61 : vector<128x128xf32>
    %63 = tpu.iota {dimensions = array<i32: 0>} : vector<128x128xi32>
    %64 = tpu.iota {dimensions = array<i32: 1>} : vector<128x128xi32>
    %65 = arith.cmpi eq, %63, %64 : vector<128x128xi32>
    %cst_47 = arith.constant 0.000000e+00 : f32
    %66 = vector.broadcast %cst_47 : f32 to vector<128x128xf32>
    %67 = arith.select %65, %62, %66 : vector<128x128xi1>, vector<128x128xf32>
    %cst_48 = arith.constant dense<0.000000e+00> : vector<128xf32>
    %68 = vector.multi_reduction <add>, %67, %cst_48 [0] : vector<128x128xf32> to vector<128xf32>
    %69 = vector.shape_cast %68 : vector<128xf32> to vector<1x128xf32>
    %70 = arith.negf %69 : vector<1x128xf32>
    %71 = math.exp %70 : vector<1x128xf32>
    %cst_49 = arith.constant 1.000000e+00 : f32
    %72 = vector.broadcast %cst_49 : f32 to vector<1x128xf32>
    %73 = arith.addf %72, %71 : vector<1x128xf32>
    %74 = arith.divf %72, %73 : vector<1x128xf32>
    %c0_50 = arith.constant 0 : index
    %c0_51 = arith.constant 0 : index
    %75 = vector.load %arg18[%c0_50, %c0_51] : memref<1x128xf32, #tpu.memory_space<vmem>>, vector<1x128xf32>
    tpu.vector_store %arg18[%c0_50, %c0_51], %74 {strides = array<i32>} : memref<1x128xf32, #tpu.memory_space<vmem>>, vector<1x128xf32>,
    return
  }
  func.func @transform_0(%arg0: i32) -> (i32, i32) {
    %c0_i32 = arith.constant 0 : i32
    %c0_i32_0 = arith.constant 0 : i32
    return %arg0, %c0_i32 : i32, i32
  }
  func.func @transform_1(%arg0: i32) -> (i32, i32) {
    %c0_i32 = arith.constant 0 : i32
    %c0_i32_0 = arith.constant 0 : i32
    %c0_i32_1 = arith.constant 0 : i32
    return %c0_i32, %c0_i32_0 : i32, i32
  }
  func.func @transform_2(%arg0: i32) -> (i32, i32) {
    %c0_i32 = arith.constant 0 : i32
    %c0_i32_0 = arith.constant 0 : i32
    %c0_i32_1 = arith.constant 0 : i32
    return %c0_i32, %c0_i32_0 : i32, i32
  }
  func.func @transform_3(%arg0: i32) -> (i32, i32) {
    %c0_i32 = arith.constant 0 : i32
    %c0_i32_0 = arith.constant 0 : i32
    %c0_i32_1 = arith.constant 0 : i32
    return %c0_i32, %c0_i32_0 : i32, i32
  }
  func.func @transform_4(%arg0: i32) -> (i32, i32) {
    %c0_i32 = arith.constant 0 : i32
    %c0_i32_0 = arith.constant 0 : i32
    %c0_i32_1 = arith.constant 0 : i32
    return %c0_i32, %c0_i32_0 : i32, i32
  }
  func.func @transform_5(%arg0: i32) -> (i32, i32) {
    %c0_i32 = arith.constant 0 : i32
    %c0_i32_0 = arith.constant 0 : i32
    %c0_i32_1 = arith.constant 0 : i32
    return %c0_i32, %c0_i32_0 : i32, i32
  }
  func.func @transform_6(%arg0: i32) -> (i32, i32) {
    %c0_i32 = arith.constant 0 : i32
    %c0_i32_0 = arith.constant 0 : i32
    %c0_i32_1 = arith.constant 0 : i32
    return %c0_i32, %c0_i32_0 : i32, i32
  }
  func.func @transform_7(%arg0: i32) -> (i32, i32) {
    %c0_i32 = arith.constant 0 : i32
    %c0_i32_0 = arith.constant 0 : i32
    %c0_i32_1 = arith.constant 0 : i32
    return %c0_i32, %c0_i32_0 : i32, i32
  }
  func.func @transform_8(%arg0: i32) -> (i32, i32) {
    %c0_i32 = arith.constant 0 : i32
    %c0_i32_0 = arith.constant 0 : i32
    %c0_i32_1 = arith.constant 0 : i32
    return %c0_i32, %c0_i32_0 : i32, i32
  }
  func.func @transform_9(%arg0: i32) -> (i32, i32) {
    %c0_i32 = arith.constant 0 : i32
    %c0_i32_0 = arith.constant 0 : i32
    %c0_i32_1 = arith.constant 0 : i32
    return %c0_i32, %c0_i32_0 : i32, i32
  }
  func.func @transform_10(%arg0: i32) -> (i32, i32) {
    %c0_i32 = arith.constant 0 : i32
    %c0_i32_0 = arith.constant 0 : i32
    %c0_i32_1 = arith.constant 0 : i32
    return %c0_i32, %c0_i32_0 : i32, i32
  }
  func.func @transform_11(%arg0: i32) -> (i32, i32) {
    %c0_i32 = arith.constant 0 : i32
    %c0_i32_0 = arith.constant 0 : i32
    %c0_i32_1 = arith.constant 0 : i32
    return %c0_i32, %c0_i32_0 : i32, i32
  }
  func.func @transform_12(%arg0: i32) -> (i32, i32) {
    %c0_i32 = arith.constant 0 : i32
    %c0_i32_0 = arith.constant 0 : i32
    %c0_i32_1 = arith.constant 0 : i32
    return %c0_i32, %c0_i32_0 : i32, i32
  }
  func.func @transform_13(%arg0: i32) -> (i32, i32) {
    %c0_i32 = arith.constant 0 : i32
    %c0_i32_0 = arith.constant 0 : i32
    %c0_i32_1 = arith.constant 0 : i32
    return %c0_i32, %c0_i32_0 : i32, i32
  }
  func.func @transform_14(%arg0: i32) -> (i32, i32) {
    %c0_i32 = arith.constant 0 : i32
    %c0_i32_0 = arith.constant 0 : i32
    %c0_i32_1 = arith.constant 0 : i32
    return %c0_i32, %c0_i32_0 : i32, i32
  }
  func.func @transform_15(%arg0: i32) -> (i32, i32) {
    %c0_i32 = arith.constant 0 : i32
    %c0_i32_0 = arith.constant 0 : i32
    %c0_i32_1 = arith.constant 0 : i32
    return %c0_i32, %c0_i32_0 : i32, i32
  }
  func.func @transform_16(%arg0: i32) -> (i32, i32) {
    %c0_i32 = arith.constant 0 : i32
    %c0_i32_0 = arith.constant 0 : i32
    %c0_i32_1 = arith.constant 0 : i32
    return %c0_i32, %c0_i32_0 : i32, i32
  }
  func.func @transform_17(%arg0: i32) -> (i32, i32) {
    %c0_i32 = arith.constant 0 : i32
    %c0_i32_0 = arith.constant 0 : i32
    return %arg0, %c0_i32 : i32, i32
  }
}

</mosaic_0001>

<bundles_post_ra>
// kernel: net_forward.1
= control target key start
LH: loop header
LB: loop body
LE: loop exit
PB: predicated region body
PF: predicated region fallthrough
CT: control target
= control target key end

     0   :  { %s3090_s0 = inlined_call_operand.vmem [shape: f32[128,16], index: 0, kind: input, shape index: {}]   ;;  %s3091_s1 = inlined_call_operand.vmem [shape: bf16[16,128], index: 1, kind: input, shape index: {}]   ;;  %s3092_s2 = inlined_call_operand.vmem [shape: f32[1,128], index: 2, kind: input, shape index: {}]   ;;  %s3093_s3 = inlined_call_operand.hbm [shape: bf16[128,128], index: 3, kind: input, shape index: {}]   ;;  %s3094_s4 = inlined_call_operand.hbm [shape: f32[1,128], index: 4, kind: input, shape index: {}]   ;;  %s3095_s5 = inlined_call_operand.vmem [shape: bf16[128,256], index: 5, kind: input, shape index: {}]   ;;  %s3096_s6 = inlined_call_operand.vmem [shape: f32[1,256], index: 6, kind: input, shape index: {}]   ;;  %s3097_s7 = inlined_call_operand.hbm [shape: bf16[256,256], index: 7, kind: input, shape index: {}]   ;;  %s3098_s8 = inlined_call_operand.vmem [shape: f32[1,256], index: 8, kind: input, shape index: {}]   ;;  %s3099_s9 = inlined_call_operand.hbm [shape: bf16[256,128], index: 9, kind: input, shape index: {}]   ;;  %s3100_s10 = inlined_call_operand.vmem [shape: f32[1,128], index: 10, kind: input, shape index: {}]   ;;  %s3101_s11 = inlined_call_operand.hbm [shape: bf16[128,128], index: 11, kind: input, shape index: {}]   ;;  %s3102_s12 = inlined_call_operand.vmem [shape: f32[1,128], index: 12, kind: input, shape index: {}]   ;;  %s3103_s13 = inlined_call_operand.hbm [shape: bf16[128,128], index: 13, kind: input, shape index: {}]   ;;  %s3104_s14 = inlined_call_operand.vmem [shape: f32[1,128], index: 14, kind: input, shape index: {}]   ;;  %s3105_s15 = inlined_call_operand.hbm [shape: bf16[128,128], index: 15, kind: input, shape index: {}]   ;;  %s3106_s16 = inlined_call_operand.vmem [shape: f32[1,128], index: 16, kind: input, shape index: {}]   ;;  %s3107_s17 = inlined_call_operand.vmem [shape: f32[1,128], index: 17, kind: output, shape index: {}]  }
   0x1   :  { %3109 = sst [smem:[#allocation17_spill]] %s3090_s0 }
   0x2   :  { %3110 = sst [smem:[#allocation18_spill]] %s3091_s1 }
   0x3   :  { %22 = vsyncpa [#allocation3], 0 }
   0x4   :  { %23 = vsyncpa [#allocation5], 0 }
   0x5   :  { %24 = vsyncpa [#allocation8], 0  ;;  %s50_s26 = sshll.u32 %s3094_s4, 4  ;;  %s51_s26 = int_to_ptr.hbm [resolvable:$true] %s50_s26 }
   0x6   :  { %25 = vsyncpa [#allocation11], 0  ;;  %s2576_s27 = smov [#allocation4]   ;;  %s79_s30 = sshll.u32 %s3099_s9, 4  ;;  %s80_s30 = int_to_ptr.hbm [resolvable:$true] %s79_s30 }
   0x7   :  { %s52_s28 = sshll.u32 %s2576_s27, 4  ;;  %s2577_s18 = smov [#allocation7]   ;;  %s53_s28 = int_to_ptr.vmem [resolvable:$true] %s52_s28 }
   0x8   :  { %55 = dma.hbm_to_vmem [thread:$0]  %s51_s26, 16, %s53_s28, [#allocation5]  }
   0x9   :  { %s81_s19 = sshll.u32 %s2577_s18, 4  ;;  %s109_s21 = sshll.u32 %s3103_s13, 4  ;;  %s82_s19 = int_to_ptr.vmem [resolvable:$true] %s81_s19  ;;  %s110_s21 = int_to_ptr.hbm [resolvable:$true] %s109_s21 }
   0xa   :  { %s2578_s4 = smov 64   ;;  %s2579_s22 = smov 4  }
   0xb   :  { %87 = dma.hbm_to_vmem [thread:$0]  %s80_s30, 2048, %s82_s19, [#allocation8], %s2578_s4, %s2578_s4, %s2579_s22  }
   0xc   :  { %s36_s25 = sshll.u32 %s3093_s3, 4  ;;  %s2580_s9 = smov [#allocation10]   ;;  %s37_s25 = int_to_ptr.hbm [resolvable:$true] %s36_s25 }
   0xd   :  { %s111_s26 = sshll.u32 %s2580_s9, 4  ;;  %s2581_s13 = smov [#allocation2]   ;;  %s112_s26 = int_to_ptr.vmem [resolvable:$true] %s111_s26 }
   0xe   :  { %117 = dma.hbm_to_vmem [thread:$0]  %s110_s21, 1024, %s112_s26, [#allocation11], %s2578_s4, %s2578_s4, %s2579_s22  }
   0xf   :  { %s38_s27 = sshll.u32 %s2581_s13, 4  ;;  %s64_s0 = sshll.u32 %s3097_s7, 4  ;;  %s39_s27 = int_to_ptr.vmem [resolvable:$true] %s38_s27  ;;  %s65_s0 = int_to_ptr.hbm [resolvable:$true] %s64_s0 }
  0x10   :  { %44 = dma.hbm_to_vmem [thread:$0]  %s37_s25, 1024, %s39_s27, [#allocation3], %s2578_s4, %s2578_s4, %s2579_s22  }
  0x11   :  { %s2582_s3 = smov [#allocation6]   ;;  %s94_s1 = sshll.u32 %s3101_s11, 4  ;;  %s95_s1 = int_to_ptr.hbm [resolvable:$true] %s94_s1 }
  0x12   :  { %s66_s30 = sshll.u32 %s2582_s3, 4  ;;  %s2583_s20 = smov 128   ;;  %s67_s30 = int_to_ptr.vmem [resolvable:$true] %s66_s30 }
  0x13   :  { %s2584_s21 = smov 8   ;;  %s2585_s23 = smov [#allocation9]  }
  0x14   :  { %72 = dma.hbm_to_vmem [thread:$0]  %s65_s0, 4096, %s67_s30, [#allocation5], %s2583_s20, %s2583_s20, %s2584_s21  }
  0x15   :  { %s96_s24 = sshll.u32 %s2585_s23, 4  ;;  %s124_s26 = sshll.u32 %s3105_s15, 4  ;;  %s97_s24 = int_to_ptr.vmem [resolvable:$true] %s96_s24  ;;  %s125_s26 = int_to_ptr.hbm [resolvable:$true] %s124_s26 }
  0x16   :  { %102 = dma.hbm_to_vmem [thread:$0]  %s95_s1, 1024, %s97_s24, [#allocation8], %s2578_s4, %s2578_s4, %s2579_s22  }
  0x17   :  { %s2586_s25 = smov [#allocation12]  }
  0x18   :  { %s126_s13 = sshll.u32 %s2586_s25, 4  ;;  %s127_s13 = int_to_ptr.vmem [resolvable:$true] %s126_s13 }
  0x19   :  { %132 = dma.hbm_to_vmem [thread:$0]  %s125_s26, 1024, %s127_s13, [#allocation11], %s2578_s4, %s2578_s4, %s2579_s22  }
  0x1a   :  { %2568 = dma.done.wait [#allocation3], 1024  }
  0x1b   :  { %2569 = vsyncadd [#allocation3], 4294966272 }
  0x1c   :  { %2570 = dma.done.wait [#allocation5], 4112  }
  0x1d   :  { %2571 = vsyncadd [#allocation5], 4294963184 }
  0x1e   :  { %2572 = dma.done.wait [#allocation8], 3072  }
  0x1f   :  { %2573 = vsyncadd [#allocation8], 4294964224 }
  0x20   :  { %2574 = dma.done.wait [#allocation11], 2048  }
  0x21   :  { %2575 = vsyncadd [#allocation11], 4294965248  ;;  %s3111_s27 = sld [smem:[#allocation18_spill]]  ;;  %vm200_vm0 = vcmask 130048   ;;  %v2287_v12 = vld [vmem:[#allocation2 + $0x38] sm:$0xff]  ;;  %v2286_v14 = vld [vmem:[#allocation2 + $0x30] sm:$0xff] }
  0x22   :  { %s3112_s0 = sld [smem:[#allocation17_spill]]  ;;  %v2285_v15 = vld [vmem:[#allocation2 + $0x28] sm:$0xff]  ;;  %v2284_v22 = vld [vmem:[#allocation2 + $0x20] sm:$0xff]  ;;  %v2283_v26 = vld [vmem:[#allocation2 + $0x18] sm:$0xff] }
  0x23   :  { %v2282_v30 = vld [vmem:[#allocation2 + $0x10] sm:$0xff]  ;;  %v2281_v31 = vld [vmem:[#allocation2 + $0x8] sm:$0xff]  ;;  %v2280_v32 = vld [vmem:[#allocation2] sm:$0xff] }
  0x24   :  { %v2775_v34 = vld [vmem:[%s3092_s2] ss:$0 sm:$0xff] }
  0x27   :  { %v2279_v0 = vld [vmem:[%s3111_s27] sm:$0xff] }
  0x28   :  { %v164_v1 = vld [vmem:[%s3112_s0] sm:$0xff]  ;;  %v165_v2 = vld [vmem:[%s3112_s0 + $0x8] sm:$0xff]  ;;  %232 = vmatpush.bf16.msra.mxu0 %v2279_v0  ;;  %2376 = vmatpush.bf16.msra.mxu1 %v2279_v0  ;;  %v178_v10 = vld [vmem:[%s3112_s0 + $0x70] sm:$0xff] }
  0x29   :  { %v180_v3 = vpack.c.bf16 %v165_v2, %v164_v1  ;;  %v168_v4 = vld [vmem:[%s3112_s0 + $0x20] sm:$0xff]  ;;  %v169_v5 = vld [vmem:[%s3112_s0 + $0x28] sm:$0xff]  ;;  %2377 = vmatpush.bf16.msra.mxu2 %v2279_v0  ;;  %2378 = vmatpush.bf16.msra.mxu3 %v2279_v0  ;;  %v179_v11 = vld [vmem:[%s3112_s0 + $0x78] sm:$0xff] }
  0x2a   :  { %v182_v6 = vpack.c.bf16 %v169_v5, %v168_v4  ;;  %v172_v7 = vld [vmem:[%s3112_s0 + $0x40] sm:$0xff]  ;;  %v173_v8 = vld [vmem:[%s3112_s0 + $0x48] sm:$0xff]  ;;  %v187_v13 = vpack.c.bf16 %v179_v11, %v178_v10  ;;  %v166_v16 = vld [vmem:[%s3112_s0 + $0x10] sm:$0xff] }
  0x2b   :  { %v184_v9 = vpack.c.bf16 %v173_v8, %v172_v7  ;;  %1886 = vmatmul.msk.bf16.vlgmr.msra.gmra.mxu0 %vm200_vm0, %v180_v3  ;;  %v167_v17 = vld [vmem:[%s3112_s0 + $0x18] sm:$0xff]  ;;  %v170_v18 = vld [vmem:[%s3112_s0 + $0x30] sm:$0xff]  ;;  %v176_v27 = vld [vmem:[%s3112_s0 + $0x60] sm:$0xff] }
  0x2c   :  { %1888 = vmatmul.msk.bf16.vlgmr.msra.gmra.mxu1 %vm200_vm0, %v182_v6  ;;  %1893 = vmatmul.msk.bf16.vlgmr.msra.gmra.mxu3 %vm200_vm0, %v187_v13  ;;  %v171_v19 = vld [vmem:[%s3112_s0 + $0x38] sm:$0xff]  ;;  %v174_v20 = vld [vmem:[%s3112_s0 + $0x50] sm:$0xff]  ;;  %v181_v23 = vpack.c.bf16 %v167_v17, %v166_v16  ;;  %v177_v28 = vld [vmem:[%s3112_s0 + $0x68] sm:$0xff] }
  0x2d   :  { %1890 = vmatmul.msk.bf16.vlgmr.msra.gmra.mxu2 %vm200_vm0, %v184_v9  ;;  %366 = vmatpush.bf16.msrb.mxu1 %v2287_v12  ;;  %v175_v21 = vld [vmem:[%s3112_s0 + $0x58] sm:$0xff]  ;;  %v183_v24 = vpack.c.bf16 %v171_v19, %v170_v18  ;;  %v186_v29 = vpack.c.bf16 %v177_v28, %v176_v27  ;;  %v1984_v0 = vld [vmem:[%s3095_s5 + $0x70] sm:$0xf]  ;;  %v1976_v10 = vld [vmem:[%s3095_s5 + $0x60] sm:$0xf] }
  0x2e   :  { %v185_v25 = vpack.c.bf16 %v175_v21, %v174_v20  ;;  %v2303_v1 = vld [vmem:[%s3095_s5 + $0x74] sm:$0xf0]  ;;  %v2301_v11 = vld [vmem:[%s3095_s5 + $0x64] sm:$0xf0]  ;;  %v1968_v12 = vld [vmem:[%s3095_s5 + $0x50] sm:$0xf] }
  0x2f   :  { %v1985_v2 = vor.u32 %v2303_v1, %v1984_v0  ;;  %v1977_v13 = vor.u32 %v2301_v11, %v1976_v10  ;;  %v1986_v16 = vld [vmem:[%s3095_s5 + $0x78] sm:$0xf0]  ;;  %v1960_v19 = vld [vmem:[%s3095_s5 + $0x40] sm:$0xf]  ;;  %v2297_v20 = vld [vmem:[%s3095_s5 + $0x44] sm:$0xf0] }
  0x30   :  { %v2300_v28 = vld [vmem:[%s3095_s5 + $0x64] sm:$0xf]  ;;  %v2889_v11 = vld [vmem:[#allocation4] ss:$0 sm:$0xff] }
  0x31   :  { %367 = vmatpush.bf16.msrb.mxu1 %v2286_v14  ;;  %541 = vmatpush.bf16.msrb.mxu2 %v1985_v2  ;;  %v2299_v14 = vld [vmem:[%s3095_s5 + $0x54] sm:$0xf0]  ;;  %v1928_v2 = vld [vmem:[%s3095_s5] sm:$0xf] }
  0x32   :  { %v1969_v18 = vor.u32 %v2299_v14, %v1968_v12  ;;  %v2318_v12 = vld [vmem:[#allocation6 + $0x74] sm:$0xf] }
  0x35   :  { %368 = vmatpush.bf16.msrb.mxu1 %v2285_v15  ;;  %v2302_v15 = vld [vmem:[%s3095_s5 + $0x74] sm:$0xf]  ;;  %542 = vmatpush.bf16.msrb.mxu2 %v1977_v13  ;;  %v2050_v13 = vld [vmem:[#allocation6 + $0x78] sm:$0xf0] }
  0x36   :  { %v1989_v17 = vor.u32 %v2302_v15, %v1986_v16  ;;  %v2053_v14 = vor.u32 %v2318_v12, %v2050_v13  ;;  %v2334_v15 = vld [vmem:[#allocation6 + $0xf4] sm:$0xf]  ;;  %v2114_v16 = vld [vmem:[#allocation6 + $0xf8] sm:$0xf0] }
  0x37   :  { %v2310_v13 = vld [vmem:[#allocation6 + $0x34] sm:$0xf] }
  0x38   :  { %590 = vmatpush.bf16.msrb.mxu3 %v1989_v17  ;;  %v2112_v17 = vld [vmem:[#allocation6 + $0xf0] sm:$0xf] }
  0x39   :  { %369 = vmatpush.bf16.msrb.mxu1 %v2284_v22  ;;  %543 = vmatpush.bf16.msrb.mxu2 %v1969_v18  ;;  %v2117_v18 = vor.u32 %v2334_v15, %v2114_v16  ;;  %v2326_v16 = vld [vmem:[#allocation6 + $0xb4] sm:$0xf] }
  0x3b   :  { %1887 = vmatmul.msk.bf16.gmra.mxu0 %vm200_vm0, %v181_v23  ;;  %v1961_v23 = vor.u32 %v2297_v20, %v1960_v19  ;;  %v2335_v19 = vld [vmem:[#allocation6 + $0xf4] sm:$0xf0] }
  0x3c   :  { %1889 = vmatmul.msk.bf16.gmra.mxu1 %vm200_vm0, %v183_v24  ;;  %v2113_v20 = vor.u32 %v2335_v19, %v2112_v17  ;;  %v2082_v17 = vld [vmem:[#allocation6 + $0xb8] sm:$0xf0] }
  0x3d   :  { %1891 = vmatmul.msk.bf16.gmra.mxu2 %vm200_vm0, %v185_v25  ;;  %370 = vmatpush.bf16.msrb.mxu1 %v2283_v26  ;;  %v2085_v19 = vor.u32 %v2326_v16, %v2082_v17  ;;  %v2008_v16 = vld [vmem:[#allocation6 + $0x20] sm:$0xf]  ;;  %v2309_v17 = vld [vmem:[#allocation6 + $0x24] sm:$0xf0] }
  0x3e   :  { %544 = vmatpush.bf16.msrb.mxu2 %v1961_v23 }
  0x41   :  { %371 = vmatpush.bf16.msrb.mxu1 %v2282_v30 }
  0x45   :  { %372 = vmatpush.bf16.msrb.mxu1 %v2281_v31  ;;  %v1952_v31 = vld [vmem:[%s3095_s5 + $0x30] sm:$0xf] }
  0x49   :  { %373 = vmatpush.bf16.msrb.mxu1 %v2280_v32  ;;  %v2295_v32 = vld [vmem:[%s3095_s5 + $0x34] sm:$0xf0] }
  0x4d   :  { %1892 = vmatmul.msk.bf16.gmra.mxu2 %vm200_vm0, %v186_v29  ;;  %v1978_v29 = vld [vmem:[%s3095_s5 + $0x68] sm:$0xf0]  ;;  %934 = vmatpush.bf16.msra.mxu1 %v2113_v20  ;;  %v2327_v20 = vld [vmem:[#allocation6 + $0xb4] sm:$0xf0] }
  0x4e   :  { %v1981_v30 = vor.u32 %v2300_v28, %v1978_v29  ;;  %v2316_v28 = vld [vmem:[#allocation6 + $0x64] sm:$0xf]  ;;  %v2042_v29 = vld [vmem:[#allocation6 + $0x68] sm:$0xf0] }
  0x50   :  { %591 = vmatpush.bf16.msrb.mxu3 %v1981_v30  ;;  %v2045_v30 = vor.u32 %v2316_v28, %v2042_v29  ;;  %v2308_v29 = vld [vmem:[#allocation6 + $0x24] sm:$0xf] }
  0xa8   :  { %v234_v33 = vpop.f32.mrf.mxu0 }
  0xa9   :  { %v235_v35 = vadd.f32 %v2775_v34, %v234_v33  ;;  %v244_v42 = vpop.f32.mrf.mxu1  ;;  %v2298_v33 = vld [vmem:[%s3095_s5 + $0x54] sm:$0xf] }
  0xaa   :  { %v245_v50 = vadd.f32 %v2775_v34, %v244_v42 }
  0xab   :  { %v274_v38 = vmax.f32 %v235_v35, 0.0  ;;  %v1953_v35 = vor.u32 %v2295_v32, %v1952_v31  ;;  %v2332_v31 = vld [vmem:[#allocation6 + $0xe4] sm:$0xf]  ;;  %v2106_v32 = vld [vmem:[#allocation6 + $0xe8] sm:$0xf0] }
  0xac   :  { %v278_v53 = vmax.f32 %v245_v50, 0.0  ;;  %v2294_v50 = vld [vmem:[%s3095_s5 + $0x34] sm:$0xf] }
  0xad   :  { %545 = vmatpush.bf16.msrb.mxu2 %v1953_v35  ;;  %v2109_v35 = vor.u32 %v2332_v31, %v2106_v32  ;;  %v2324_v32 = vld [vmem:[#allocation6 + $0xa4] sm:$0xf] }
  0xb0   :  { %v236_v36 = vpop.f32.mrf.mxu0  ;;  %v254_v56 = vpop.f32.mrf.mxu2 }
  0xb1   :  { %v237_v37 = vadd.f32 %v2775_v34, %v236_v36  ;;  %v246_v49 = vpop.f32.mrf.mxu1  ;;  %v255_v4 = vadd.f32 %v2775_v34, %v254_v56  ;;  %v1970_v36 = vld [vmem:[%s3095_s5 + $0x58] sm:$0xf0] }
  0xb2   :  { %v247_v51 = vadd.f32 %v2775_v34, %v246_v49 }
  0xb3   :  { %v275_v39 = vmax.f32 %v237_v37, 0.0  ;;  %v282_v6 = vmax.f32 %v255_v4, 0.0  ;;  %v2296_v37 = vld [vmem:[%s3095_s5 + $0x44] sm:$0xf] }
  0xb4   :  { %v279_v54 = vmax.f32 %v247_v51, 0.0  ;;  %v1954_v51 = vld [vmem:[%s3095_s5 + $0x38] sm:$0xf0]  ;;  %v2288_v4 = vld [vmem:[%s3095_s5 + $0x4] sm:$0xf] }
  0xb5   :  { %v290_v40 = vpack.c.bf16 %v275_v39, %v274_v38  ;;  %v1973_v38 = vor.u32 %v2298_v33, %v1970_v36  ;;  %v1962_v39 = vld [vmem:[%s3095_s5 + $0x48] sm:$0xf0]  ;;  %v2104_v33 = vld [vmem:[#allocation6 + $0xe0] sm:$0xf] }
  0xb6   :  { %v292_v55 = vpack.c.bf16 %v279_v54, %v278_v53  ;;  %v2292_v54 = vld [vmem:[%s3095_s5 + $0x24] sm:$0xf]  ;;  %v2333_v36 = vld [vmem:[#allocation6 + $0xe4] sm:$0xf0] }
  0xb7   :  { %374 = vmatmul.bf16.vlgmr.msrb.gmra.mxu1 %v290_v40  ;;  %v1944_v40 = vld [vmem:[%s3095_s5 + $0x20] sm:$0xf]  ;;  %592 = vmatpush.bf16.msrb.mxu3 %v1973_v38 }
  0xb8   :  { %v239_v41 = vpop.f32.mrf.mxu0  ;;  %v256_v62 = vpop.f32.mrf.mxu2 }
  0xb9   :  { %v240_v43 = vadd.f32 %v2775_v34, %v239_v41  ;;  %v249_v52 = vpop.f32.mrf.mxu1  ;;  %v257_v5 = vadd.f32 %v2775_v34, %v256_v62  ;;  %v2293_v41 = vld [vmem:[%s3095_s5 + $0x24] sm:$0xf0] }
  0xba   :  { %v250_v58 = vadd.f32 %v2775_v34, %v249_v52  ;;  %v1957_v52 = vor.u32 %v2294_v50, %v1954_v51  ;;  %v2096_v50 = vld [vmem:[#allocation6 + $0xd0] sm:$0xf] }
  0xbb   :  { %v276_v46 = vmax.f32 %v240_v43, 0.0  ;;  %v283_v7 = vmax.f32 %v257_v5, 0.0  ;;  %v1945_v43 = vor.u32 %v2293_v41, %v1944_v40 }
  0xbc   :  { %v280_v60 = vmax.f32 %v250_v58, 0.0  ;;  %v2291_v58 = vld [vmem:[%s3095_s5 + $0x14] sm:$0xf0] }
  0xbd   :  { %v294_v8 = vpack.c.bf16 %v283_v7, %v282_v6  ;;  %546 = vmatpush.bf16.msrb.mxu2 %v1945_v43  ;;  %v1930_v6 = vld [vmem:[%s3095_s5 + $0x8] sm:$0xf0] }
  0xbe   :  { %v1933_v7 = vor.u32 %v2288_v4, %v1930_v6  ;;  %v2329_v4 = vld [vmem:[#allocation6 + $0xc4] sm:$0xf0] }
  0xc0   :  { %v241_v44 = vpop.f32.mrf.mxu0  ;;  %v259_v3 = vpop.f32.mrf.mxu2 }
  0xc1   :  { %v242_v45 = vadd.f32 %v2775_v34, %v241_v44  ;;  %v251_v57 = vpop.f32.mrf.mxu1  ;;  %v260_v21 = vadd.f32 %v2775_v34, %v259_v3  ;;  %v1965_v44 = vor.u32 %v2296_v37, %v1962_v39  ;;  %v2289_v3 = vld [vmem:[%s3095_s5 + $0x4] sm:$0xf0]  ;;  %v2105_v37 = vor.u32 %v2333_v36, %v2104_v33  ;;  %v2074_v33 = vld [vmem:[#allocation6 + $0xa8] sm:$0xf0] }
  0xc2   :  { %v252_v59 = vadd.f32 %v2775_v34, %v251_v57  ;;  %v1936_v57 = vld [vmem:[%s3095_s5 + $0x10] sm:$0xf]  ;;  %v1929_v5 = vor.u32 %v2289_v3, %v1928_v2  ;;  %v2088_v2 = vld [vmem:[#allocation6 + $0xc0] sm:$0xf]  ;;  %v2077_v36 = vor.u32 %v2324_v32, %v2074_v33 }
  0xc3   :  { %v277_v47 = vmax.f32 %v242_v45, 0.0  ;;  %v284_v25 = vmax.f32 %v260_v21, 0.0  ;;  %593 = vmatpush.bf16.msrb.mxu3 %v1965_v44  ;;  %935 = vmatpush.bf16.msra.mxu1 %v2105_v37  ;;  %v2325_v37 = vld [vmem:[#allocation6 + $0xa4] sm:$0xf0]  ;;  %v1992_v33 = vld [vmem:[#allocation6] sm:$0xf] }
  0xc4   :  { %v281_v61 = vmax.f32 %v252_v59, 0.0  ;;  %v1937_v59 = vor.u32 %v2291_v58, %v1936_v57 }
  0xc5   :  { %v291_v48 = vpack.c.bf16 %v277_v47, %v276_v46  ;;  %v269_v47 = vpop.f32.mrf.mxu3 }
  0xc6   :  { %v293_v63 = vpack.c.bf16 %v281_v61, %v280_v60  ;;  %v2290_v60 = vld [vmem:[%s3095_s5 + $0x14] sm:$0xf]  ;;  %v1938_v61 = vld [vmem:[%s3095_s5 + $0x18] sm:$0xf0]  ;;  %547 = vmatpush.bf16.msrb.mxu2 %v1937_v59  ;;  %v270_v0 = vadd.f32 %v2775_v34, %v269_v47 }
  0xc7   :  { %379 = vmatmul.bf16.gmra.mxu1 %v291_v48  ;;  %594 = vmatpush.bf16.msrb.mxu3 %v1957_v52  ;;  %v2331_v52 = vld [vmem:[#allocation6 + $0xd4] sm:$0xf0] }
  0xc8   :  { %v261_v9 = vpop.f32.mrf.mxu2 }
  0xc9   :  { %v262_v22 = vadd.f32 %v2775_v34, %v261_v9 }
  0xca   :  { %548 = vmatpush.bf16.msrb.mxu2 %v1929_v5  ;;  %v2089_v5 = vor.u32 %v2329_v4, %v2088_v2 }
  0xcb   :  { %v285_v26 = vmax.f32 %v262_v22, 0.0 }
  0xcd   :  { %v295_v27 = vpack.c.bf16 %v285_v26, %v284_v25  ;;  %v271_v62 = vpop.f32.mrf.mxu3 }
  0xce   :  { %v272_v1 = vadd.f32 %v2775_v34, %v271_v62  ;;  %983 = vmatpush.bf16.msra.mxu2 %v2053_v14  ;;  %v2026_v62 = vld [vmem:[#allocation6 + $0x48] sm:$0xf0]  ;;  %v2018_v14 = vld [vmem:[#allocation6 + $0x38] sm:$0xf0] }
  0xcf   :  { %v2021_v15 = vor.u32 %v2310_v13, %v2018_v14  ;;  %v2311_v13 = vld [vmem:[#allocation6 + $0x34] sm:$0xf0] }
  0xd0   :  { %v264_v24 = vpop.f32.mrf.mxu2 }
  0xd1   :  { %v265_v45 = vadd.f32 %v2775_v34, %v264_v24 }
  0xd2   :  { %984 = vmatpush.bf16.msra.mxu2 %v2045_v30  ;;  %v2010_v30 = vld [vmem:[#allocation6 + $0x28] sm:$0xf0] }
  0xd3   :  { %v286_v48 = vmax.f32 %v265_v45, 0.0  ;;  %v2314_v45 = vld [vmem:[#allocation6 + $0x54] sm:$0xf]  ;;  %v2013_v31 = vor.u32 %v2308_v29, %v2010_v30 }
  0xd7   :  { %384 = vmatmul.bf16.gmra.mxu1 %v292_v55  ;;  %v1946_v55 = vld [vmem:[%s3095_s5 + $0x28] sm:$0xf0] }
  0xd8   :  { %v266_v42 = vpop.f32.mrf.mxu2  ;;  %v1949_v56 = vor.u32 %v2292_v54, %v1946_v55 }
  0xd9   :  { %v267_v46 = vadd.f32 %v2775_v34, %v266_v42  ;;  %v288_v34 = vmax.f32 %v270_v0, 0.0  ;;  %v2328_v0 = vld [vmem:[#allocation6 + $0xc4] sm:$0xf] }
  0xda   :  { %595 = vmatpush.bf16.msrb.mxu3 %v1949_v56 }
  0xdb   :  { %v287_v49 = vmax.f32 %v267_v46, 0.0  ;;  %v2034_v46 = vld [vmem:[#allocation6 + $0x58] sm:$0xf0] }
  0xdc   :  { %v2037_v47 = vor.u32 %v2314_v45, %v2034_v46  ;;  %v2306_v45 = vld [vmem:[#allocation6 + $0x14] sm:$0xf]  ;;  %v2002_v46 = vld [vmem:[#allocation6 + $0x18] sm:$0xf0] }
  0xdd   :  { %v296_v53 = vpack.c.bf16 %v287_v49, %v286_v48  ;;  %v2330_v48 = vld [vmem:[#allocation6 + $0xd4] sm:$0xf]  ;;  %v2098_v49 = vld [vmem:[#allocation6 + $0xd8] sm:$0xf0] }
  0xde   :  { %v2101_v51 = vor.u32 %v2330_v48, %v2098_v49  ;;  %985 = vmatpush.bf16.msra.mxu2 %v2037_v47  ;;  %v2048_v47 = vld [vmem:[#allocation6 + $0x70] sm:$0xf]  ;;  %v2005_v49 = vor.u32 %v2306_v45, %v2002_v46 }
  0xe7   :  { %389 = vmatmul.bf16.gmra.mxu1 %v293_v63  ;;  %v1941_v63 = vor.u32 %v2290_v60, %v1938_v61  ;;  %v2312_v61 = vld [vmem:[#allocation6 + $0x44] sm:$0xf] }
  0xe9   :  { %596 = vmatpush.bf16.msrb.mxu3 %v1941_v63  ;;  %v2029_v63 = vor.u32 %v2312_v61, %v2026_v62  ;;  %v2032_v61 = vld [vmem:[#allocation6 + $0x50] sm:$0xf]  ;;  %v2315_v62 = vld [vmem:[#allocation6 + $0x54] sm:$0xf0] }
  0xeb   :  { %986 = vmatpush.bf16.msra.mxu2 %v2029_v63  ;;  %v2304_v63 = vld [vmem:[#allocation6 + $0x4] sm:$0xf] }
  0xed   :  { %597 = vmatpush.bf16.msrb.mxu3 %v1933_v7 }
  0xef   :  { %987 = vmatpush.bf16.msra.mxu2 %v2021_v15 }
  0xf1   :  { %1032 = vmatpush.bf16.msra.mxu3 %v2117_v18  ;;  %v2080_v18 = vld [vmem:[#allocation6 + $0xb0] sm:$0xf] }
  0xf3   :  { %988 = vmatpush.bf16.msra.mxu2 %v2013_v31 }
  0xf5   :  { %1033 = vmatpush.bf16.msra.mxu3 %v2109_v35  ;;  %v2072_v35 = vld [vmem:[#allocation6 + $0xa0] sm:$0xf] }
  0xf7   :  { %394 = vmatmul.bf16.gmra.mxu1 %v294_v8  ;;  %v289_v8 = vmax.f32 %v272_v1, 0.0  ;;  %v2090_v1 = vld [vmem:[#allocation6 + $0xc8] sm:$0xf0]  ;;  %989 = vmatpush.bf16.msra.mxu2 %v2005_v49 }
  0xf8   :  { %v2093_v3 = vor.u32 %v2328_v0, %v2090_v1  ;;  %v1994_v0 = vld [vmem:[#allocation6 + $0x8] sm:$0xf0] }
  0xf9   :  { %v297_v9 = vpack.c.bf16 %v289_v8, %v288_v34  ;;  %1034 = vmatpush.bf16.msra.mxu3 %v2101_v51  ;;  %v2322_v51 = vld [vmem:[#allocation6 + $0x94] sm:$0xf]  ;;  %v1997_v1 = vor.u32 %v2304_v63, %v1994_v0 }
  0xfb   :  { %990 = vmatpush.bf16.msra.mxu2 %v1997_v1 }
  0xfd   :  { %1035 = vmatpush.bf16.msra.mxu3 %v2093_v3  ;;  %v2033_v3 = vor.u32 %v2315_v62, %v2032_v61 }
 0x101   :  { %1036 = vmatpush.bf16.msra.mxu3 %v2085_v19  ;;  %v2320_v19 = vld [vmem:[#allocation6 + $0x84] sm:$0xf] }
 0x105   :  { %1037 = vmatpush.bf16.msra.mxu3 %v2077_v36 }
 0x107   :  { %399 = vmatmul.bf16.gmra.mxu1 %v295_v27 }
 0x117   :  { %404 = vmatmul.bf16.gmra.mxu1 %v296_v53  ;;  %v2097_v53 = vor.u32 %v2331_v52, %v2096_v50  ;;  %v2319_v50 = vld [vmem:[#allocation6 + $0x74] sm:$0xf0]  ;;  %v2066_v52 = vld [vmem:[#allocation6 + $0x98] sm:$0xf0] }
 0x119   :  { %936 = vmatpush.bf16.msra.mxu1 %v2097_v53  ;;  %v2049_v53 = vor.u32 %v2319_v50, %v2048_v47 }
 0x11b   :  { %885 = vmatpush.bf16.msrb.mxu0 %v2049_v53 }
 0x11d   :  { %937 = vmatpush.bf16.msra.mxu1 %v2089_v5 }
 0x127   :  { %409 = vmatmul.bf16.gmra.mxu1 %v297_v9 }
 0x134   :  { %v375_v10 = vpop.f32.mrf.mxu1 }
 0x135   :  { %v376_v21 = vadd.f32 %v2889_v11, %v375_v10 }
 0x137   :  { %v415_v24 = vmax.f32 %v376_v21, 0.0  ;;  %v2081_v21 = vor.u32 %v2327_v20, %v2080_v18  ;;  %v2009_v18 = vor.u32 %v2309_v17, %v2008_v16  ;;  %v2058_v20 = vld [vmem:[#allocation6 + $0x88] sm:$0xf0] }
 0x139   :  { %938 = vmatpush.bf16.msra.mxu1 %v2081_v21  ;;  %v2056_v21 = vld [vmem:[#allocation6 + $0x80] sm:$0xf] }
 0x13c   :  { %v377_v22 = vpop.f32.mrf.mxu1 }
 0x13d   :  { %v378_v23 = vadd.f32 %v2889_v11, %v377_v22 }
 0x13f   :  { %v416_v25 = vmax.f32 %v378_v23, 0.0 }
 0x141   :  { %v431_v26 = vpack.c.bf16 %v416_v25, %v415_v24 }
 0x143   :  { %549 = vmatmul.bf16.vlgmr.msrb.gmra.mxu2 %v431_v26  ;;  %598 = vmatmul.bf16.vlgmr.msrb.gmra.mxu3 %v431_v26 }
 0x144   :  { %v380_v27 = vpop.f32.mrf.mxu1 }
 0x145   :  { %v381_v38 = vadd.f32 %v2889_v11, %v380_v27 }
 0x147   :  { %v417_v41 = vmax.f32 %v381_v38, 0.0  ;;  %v2073_v38 = vor.u32 %v2325_v37, %v2072_v35  ;;  %v2305_v35 = vld [vmem:[#allocation6 + $0x4] sm:$0xf0] }
 0x148   :  { %v1993_v36 = vor.u32 %v2305_v35, %v1992_v33 }
 0x149   :  { %939 = vmatpush.bf16.msra.mxu1 %v2073_v38  ;;  %v455_v38 = vld [vmem:[%s3096_s6] sm:$0x3] }
 0x14c   :  { %v382_v39 = vpop.f32.mrf.mxu1 }
 0x14d   :  { %v383_v40 = vadd.f32 %v2889_v11, %v382_v39 }
 0x14f   :  { %v418_v42 = vmax.f32 %v383_v40, 0.0 }
 0x151   :  { %v432_v43 = vpack.c.bf16 %v418_v42, %v417_v41 }
 0x153   :  { %554 = vmatmul.bf16.gmra.mxu2 %v432_v43  ;;  %603 = vmatmul.bf16.gmra.mxu3 %v432_v43 }
 0x154   :  { %v385_v44 = vpop.f32.mrf.mxu1 }
 0x155   :  { %v386_v54 = vadd.f32 %v2889_v11, %v385_v44 }
 0x157   :  { %v419_v57 = vmax.f32 %v386_v54, 0.0  ;;  %v2069_v54 = vor.u32 %v2322_v51, %v2066_v52 }
 0x159   :  { %1038 = vmatpush.bf16.msra.mxu3 %v2069_v54 }
 0x15c   :  { %v387_v55 = vpop.f32.mrf.mxu1 }
 0x15d   :  { %v388_v56 = vadd.f32 %v2889_v11, %v387_v55  ;;  %v2040_v55 = vld [vmem:[#allocation6 + $0x60] sm:$0xf] }
 0x15f   :  { %v420_v58 = vmax.f32 %v388_v56, 0.0  ;;  %v2317_v56 = vld [vmem:[#allocation6 + $0x64] sm:$0xf0] }
 0x161   :  { %v433_v59 = vpack.c.bf16 %v420_v58, %v419_v57  ;;  %v2064_v57 = vld [vmem:[#allocation6 + $0x90] sm:$0xf]  ;;  %v2323_v58 = vld [vmem:[#allocation6 + $0x94] sm:$0xf0] }
 0x163   :  { %559 = vmatmul.bf16.gmra.mxu2 %v433_v59  ;;  %608 = vmatmul.bf16.gmra.mxu3 %v433_v59  ;;  %v2041_v59 = vor.u32 %v2317_v56, %v2040_v55 }
 0x164   :  { %v390_v60 = vpop.f32.mrf.mxu1 }
 0x165   :  { %v391_v6 = vadd.f32 %v2889_v11, %v390_v60  ;;  %v2065_v60 = vor.u32 %v2323_v58, %v2064_v57  ;;  %886 = vmatpush.bf16.msrb.mxu0 %v2041_v59  ;;  %v2342_v58 = vld [vmem:[#allocation7 + $0x30] sm:$0xff] }
 0x166   :  { %v2350_v59 = vld [vmem:[#allocation7 + $0x70] sm:$0xff] }
 0x167   :  { %v421_v8 = vmax.f32 %v391_v6, 0.0  ;;  %940 = vmatpush.bf16.msra.mxu1 %v2065_v60  ;;  %v2024_v6 = vld [vmem:[#allocation6 + $0x40] sm:$0xf] }
 0x169   :  { %887 = vmatpush.bf16.msrb.mxu0 %v2033_v3 }
 0x16c   :  { %v392_v7 = vpop.f32.mrf.mxu1 }
 0x16d   :  { %v393_v34 = vadd.f32 %v2889_v11, %v392_v7  ;;  %v2313_v7 = vld [vmem:[#allocation6 + $0x44] sm:$0xf0] }
 0x16f   :  { %v422_v9 = vmax.f32 %v393_v34, 0.0 }
 0x171   :  { %v434_v10 = vpack.c.bf16 %v422_v9, %v421_v8  ;;  %v2025_v9 = vor.u32 %v2313_v7, %v2024_v6 }
 0x173   :  { %564 = vmatmul.bf16.gmra.mxu2 %v434_v10  ;;  %613 = vmatmul.bf16.gmra.mxu3 %v434_v10 }
 0x174   :  { %v395_v12 = vpop.f32.mrf.mxu1  ;;  %888 = vmatpush.bf16.msrb.mxu0 %v2025_v9  ;;  %v2341_v9 = vld [vmem:[#allocation7 + $0x28] sm:$0xff] }
 0x175   :  { %v396_v22 = vadd.f32 %v2889_v11, %v395_v12  ;;  %v2016_v12 = vld [vmem:[#allocation6 + $0x30] sm:$0xf] }
 0x176   :  { %v2017_v15 = vor.u32 %v2311_v13, %v2016_v12 }
 0x177   :  { %v423_v25 = vmax.f32 %v396_v22, 0.0  ;;  %v2061_v22 = vor.u32 %v2320_v19, %v2058_v20 }
 0x178   :  { %889 = vmatpush.bf16.msrb.mxu0 %v2017_v15 }
 0x179   :  { %1039 = vmatpush.bf16.msra.mxu3 %v2061_v22 }
 0x17c   :  { %v397_v23 = vpop.f32.mrf.mxu1  ;;  %890 = vmatpush.bf16.msrb.mxu0 %v2009_v18 }
 0x17d   :  { %v398_v24 = vadd.f32 %v2889_v11, %v397_v23  ;;  %v2321_v23 = vld [vmem:[#allocation6 + $0x84] sm:$0xf0] }
 0x17f   :  { %v424_v26 = vmax.f32 %v398_v24, 0.0 }
 0x181   :  { %v435_v27 = vpack.c.bf16 %v424_v26, %v423_v25  ;;  %v2057_v25 = vor.u32 %v2321_v23, %v2056_v21  ;;  %v2000_v26 = vld [vmem:[#allocation6 + $0x10] sm:$0xf] }
 0x183   :  { %569 = vmatmul.bf16.gmra.mxu2 %v435_v27  ;;  %618 = vmatmul.bf16.gmra.mxu3 %v435_v27  ;;  %v2307_v27 = vld [vmem:[#allocation6 + $0x14] sm:$0xf0] }
 0x184   :  { %v400_v28 = vpop.f32.mrf.mxu1  ;;  %v2001_v29 = vor.u32 %v2307_v27, %v2000_v26  ;;  %941 = vmatpush.bf16.msra.mxu1 %v2057_v25  ;;  %v2340_v26 = vld [vmem:[#allocation7 + $0x20] sm:$0xff] }
 0x185   :  { %v401_v39 = vadd.f32 %v2889_v11, %v400_v28  ;;  %v2348_v27 = vld [vmem:[#allocation7 + $0x60] sm:$0xff] }
 0x186   :  { %891 = vmatpush.bf16.msrb.mxu0 %v2001_v29 }
 0x187   :  { %v425_v42 = vmax.f32 %v401_v39, 0.0 }
 0x18a   :  { %892 = vmatpush.bf16.msrb.mxu0 %v1993_v36 }
 0x18c   :  { %v402_v40 = vpop.f32.mrf.mxu1 }
 0x18d   :  { %v403_v41 = vadd.f32 %v2889_v11, %v402_v40 }
 0x18f   :  { %v426_v43 = vmax.f32 %v403_v41, 0.0  ;;  %v2910_v41 = vperm.slane %v455_v38, 0 }
 0x191   :  { %v436_v44 = vpack.c.bf16 %v426_v43, %v425_v42  ;;  %v2343_v42 = vld [vmem:[#allocation7 + $0x38] sm:$0xff] }
 0x192   :  { %v2351_v43 = vld [vmem:[#allocation7 + $0x78] sm:$0xff]  ;;  %1261 = vmatpush.bf16.msra.mxu0 %v2343_v42 }
 0x193   :  { %574 = vmatmul.bf16.gmra.mxu2 %v436_v44  ;;  %623 = vmatmul.bf16.gmra.mxu3 %v436_v44 }
 0x194   :  { %v405_v48 = vpop.f32.mrf.mxu1  ;;  %1310 = vmatpush.bf16.msrb.mxu1 %v2351_v43 }
 0x195   :  { %v406_v2 = vadd.f32 %v2889_v11, %v405_v48 }
 0x196   :  { %1262 = vmatpush.bf16.msra.mxu0 %v2342_v58 }
 0x197   :  { %v427_v34 = vmax.f32 %v406_v2, 0.0 }
 0x198   :  { %1311 = vmatpush.bf16.msrb.mxu1 %v2350_v59 }
 0x19a   :  { %1263 = vmatpush.bf16.msra.mxu0 %v2341_v9 }
 0x19c   :  { %v407_v4 = vpop.f32.mrf.mxu1 }
 0x19d   :  { %v408_v5 = vadd.f32 %v2889_v11, %v407_v4 }
 0x19e   :  { %1264 = vmatpush.bf16.msra.mxu0 %v2340_v26 }
 0x19f   :  { %v428_v8 = vmax.f32 %v408_v5, 0.0 }
 0x1a1   :  { %v437_v10 = vpack.c.bf16 %v428_v8, %v427_v34 }
 0x1a3   :  { %579 = vmatmul.bf16.gmra.mxu2 %v437_v10  ;;  %628 = vmatmul.bf16.gmra.mxu3 %v437_v10  ;;  %v2349_v10 = vld [vmem:[#allocation7 + $0x68] sm:$0xff] }
 0x1a4   :  { %v410_v14 = vpop.f32.mrf.mxu1  ;;  %1312 = vmatpush.bf16.msrb.mxu1 %v2349_v10 }
 0x1a5   :  { %v411_v24 = vadd.f32 %v2889_v11, %v410_v14 }
 0x1a7   :  { %v429_v31 = vmax.f32 %v411_v24, 0.0 }
 0x1a8   :  { %1313 = vmatpush.bf16.msrb.mxu1 %v2348_v27 }
 0x1ac   :  { %v412_v28 = vpop.f32.mrf.mxu1 }
 0x1ad   :  { %v413_v30 = vadd.f32 %v2889_v11, %v412_v28  ;;  %v2912_v11 = vperm.slane %v455_v38, 1 }
 0x1af   :  { %v430_v32 = vmax.f32 %v413_v30, 0.0 }
 0x1b1   :  { %v438_v37 = vpack.c.bf16 %v430_v32, %v429_v31 }
 0x1b3   :  { %584 = vmatmul.bf16.gmra.mxu2 %v438_v37  ;;  %633 = vmatmul.bf16.gmra.mxu3 %v438_v37 }
 0x1c6   :  { %v550_v39 = vpop.f32.mrf.mxu2  ;;  %v599_v40 = vpop.f32.mrf.mxu3 }
 0x1c7   :  { %v551_v44 = vadd.f32 %v550_v39, %v2910_v41  ;;  %v600_v45 = vadd.f32 %v599_v40, %v2912_v11 }
 0x1c9   :  { %v639_v50 = vmax.f32 %v551_v44, 0.0  ;;  %v640_v51 = vmax.f32 %v600_v45, 0.0  ;;  %v2339_v44 = vld [vmem:[#allocation7 + $0x18] sm:$0xff] }
 0x1ca   :  { %v2347_v45 = vld [vmem:[#allocation7 + $0x58] sm:$0xff]  ;;  %1265 = vmatpush.bf16.msra.mxu0 %v2339_v44 }
 0x1cb   :  { %1314 = vmatpush.bf16.msrb.mxu1 %v2347_v45  ;;  %v719_v44 = vld [vmem:[%s3098_s8] sm:$0x3] }
 0x1ce   :  { %v552_v46 = vpop.f32.mrf.mxu2  ;;  %v601_v47 = vpop.f32.mrf.mxu3 }
 0x1cf   :  { %v553_v48 = vadd.f32 %v552_v46, %v2910_v41  ;;  %v602_v49 = vadd.f32 %v601_v47, %v2912_v11 }
 0x1d1   :  { %v641_v52 = vmax.f32 %v553_v48, 0.0  ;;  %v642_v53 = vmax.f32 %v602_v49, 0.0 }
 0x1d3   :  { %v672_v54 = vpack.c.bf16 %v642_v53, %v640_v51  ;;  %v671_v55 = vpack.c.bf16 %v641_v52, %v639_v50 }
 0x1d5   :  { %893 = vmatmul.bf16.vlgmr.msrb.gmra.mxu0 %v671_v55  ;;  %942 = vmatmul.bf16.vlgmr.msra.gmra.mxu1 %v672_v54 }
 0x1d6   :  { %991 = vmatmul.bf16.vlgmr.msra.gmra.mxu2 %v671_v55  ;;  %1040 = vmatmul.bf16.vlgmr.msra.gmra.mxu3 %v672_v54  ;;  %v555_v56 = vpop.f32.mrf.mxu2  ;;  %v604_v57 = vpop.f32.mrf.mxu3 }
 0x1d7   :  { %v556_v60 = vadd.f32 %v555_v56, %v2910_v41  ;;  %v605_v61 = vadd.f32 %v604_v57, %v2912_v11 }
 0x1d9   :  { %v643_v2 = vmax.f32 %v556_v60, 0.0  ;;  %v644_v3 = vmax.f32 %v605_v61, 0.0  ;;  %v2338_v60 = vld [vmem:[#allocation7 + $0x10] sm:$0xff] }
 0x1da   :  { %v2346_v61 = vld [vmem:[#allocation7 + $0x50] sm:$0xff]  ;;  %1266 = vmatpush.bf16.msra.mxu0 %v2338_v60 }
 0x1db   :  { %1315 = vmatpush.bf16.msrb.mxu1 %v2346_v61 }
 0x1de   :  { %v557_v62 = vpop.f32.mrf.mxu2  ;;  %v606_v63 = vpop.f32.mrf.mxu3 }
 0x1df   :  { %v558_v0 = vadd.f32 %v557_v62, %v2910_v41  ;;  %v607_v1 = vadd.f32 %v606_v63, %v2912_v11 }
 0x1e1   :  { %v645_v4 = vmax.f32 %v558_v0, 0.0  ;;  %v646_v5 = vmax.f32 %v607_v1, 0.0 }
 0x1e3   :  { %v673_v6 = vpack.c.bf16 %v645_v4, %v643_v2  ;;  %v674_v7 = vpack.c.bf16 %v646_v5, %v644_v3 }
 0x1e5   :  { %898 = vmatmul.bf16.gmra.mxu0 %v673_v6  ;;  %947 = vmatmul.bf16.gmra.mxu1 %v674_v7 }
 0x1e6   :  { %996 = vmatmul.bf16.gmra.mxu2 %v673_v6  ;;  %1045 = vmatmul.bf16.gmra.mxu3 %v674_v7  ;;  %v560_v34 = vpop.f32.mrf.mxu2  ;;  %v609_v8 = vpop.f32.mrf.mxu3 }
 0x1e7   :  { %v561_v12 = vadd.f32 %v560_v34, %v2910_v41  ;;  %v610_v13 = vadd.f32 %v609_v8, %v2912_v11 }
 0x1e9   :  { %v647_v18 = vmax.f32 %v561_v12, 0.0  ;;  %v648_v19 = vmax.f32 %v610_v13, 0.0  ;;  %v2337_v12 = vld [vmem:[#allocation7 + $0x8] sm:$0xff] }
 0x1ea   :  { %v2345_v13 = vld [vmem:[#allocation7 + $0x48] sm:$0xff]  ;;  %1267 = vmatpush.bf16.msra.mxu0 %v2337_v12 }
 0x1eb   :  { %1316 = vmatpush.bf16.msrb.mxu1 %v2345_v13 }
 0x1ee   :  { %v562_v14 = vpop.f32.mrf.mxu2  ;;  %v611_v15 = vpop.f32.mrf.mxu3 }
 0x1ef   :  { %v563_v16 = vadd.f32 %v562_v14, %v2910_v41  ;;  %v612_v17 = vadd.f32 %v611_v15, %v2912_v11 }
 0x1f1   :  { %v649_v20 = vmax.f32 %v563_v16, 0.0  ;;  %v650_v21 = vmax.f32 %v612_v17, 0.0 }
 0x1f3   :  { %v675_v22 = vpack.c.bf16 %v649_v20, %v647_v18  ;;  %v676_v23 = vpack.c.bf16 %v650_v21, %v648_v19 }
 0x1f5   :  { %903 = vmatmul.bf16.gmra.mxu0 %v675_v22  ;;  %952 = vmatmul.bf16.gmra.mxu1 %v676_v23 }
 0x1f6   :  { %1001 = vmatmul.bf16.gmra.mxu2 %v675_v22  ;;  %1050 = vmatmul.bf16.gmra.mxu3 %v676_v23  ;;  %v565_v24 = vpop.f32.mrf.mxu2  ;;  %v614_v25 = vpop.f32.mrf.mxu3 }
 0x1f7   :  { %v566_v28 = vadd.f32 %v565_v24, %v2910_v41  ;;  %v615_v29 = vadd.f32 %v614_v25, %v2912_v11 }
 0x1f9   :  { %v651_v35 = vmax.f32 %v566_v28, 0.0  ;;  %v652_v36 = vmax.f32 %v615_v29, 0.0  ;;  %v2336_v28 = vld [vmem:[#allocation7] sm:$0xff] }
 0x1fa   :  { %1268 = vmatpush.bf16.msra.mxu0 %v2336_v28 }
 0x1fe   :  { %v567_v30 = vpop.f32.mrf.mxu2  ;;  %v616_v31 = vpop.f32.mrf.mxu3 }
 0x1ff   :  { %v568_v32 = vadd.f32 %v567_v30, %v2910_v41  ;;  %v617_v33 = vadd.f32 %v616_v31, %v2912_v11 }
 0x201   :  { %v653_v37 = vmax.f32 %v568_v32, 0.0  ;;  %v654_v38 = vmax.f32 %v617_v33, 0.0  ;;  %v2344_v33 = vld [vmem:[#allocation7 + $0x40] sm:$0xff] }
 0x202   :  { %1317 = vmatpush.bf16.msrb.mxu1 %v2344_v33 }
 0x203   :  { %v677_v39 = vpack.c.bf16 %v653_v37, %v651_v35  ;;  %v678_v40 = vpack.c.bf16 %v654_v38, %v652_v36 }
 0x205   :  { %908 = vmatmul.bf16.gmra.mxu0 %v677_v39  ;;  %957 = vmatmul.bf16.gmra.mxu1 %v678_v40 }
 0x206   :  { %1006 = vmatmul.bf16.gmra.mxu2 %v677_v39  ;;  %1055 = vmatmul.bf16.gmra.mxu3 %v678_v40  ;;  %v570_v42 = vpop.f32.mrf.mxu2  ;;  %v619_v43 = vpop.f32.mrf.mxu3 }
 0x207   :  { %v571_v46 = vadd.f32 %v570_v42, %v2910_v41  ;;  %v620_v47 = vadd.f32 %v619_v43, %v2912_v11 }
 0x209   :  { %v655_v52 = vmax.f32 %v571_v46, 0.0  ;;  %v656_v53 = vmax.f32 %v620_v47, 0.0  ;;  %v2359_v47 = vld [vmem:[#allocation9 + $0x38] sm:$0xff] }
 0x20a   :  { %1451 = vmatpush.bf16.msrb.mxu2 %v2359_v47 }
 0x20e   :  { %v572_v48 = vpop.f32.mrf.mxu2  ;;  %v621_v49 = vpop.f32.mrf.mxu3 }
 0x20f   :  { %v573_v50 = vadd.f32 %v572_v48, %v2910_v41  ;;  %v622_v51 = vadd.f32 %v621_v49, %v2912_v11 }
 0x211   :  { %v657_v54 = vmax.f32 %v573_v50, 0.0  ;;  %v658_v55 = vmax.f32 %v622_v51, 0.0  ;;  %v2952_v50 = vperm.slane %v719_v44, 1 }
 0x213   :  { %v679_v56 = vpack.c.bf16 %v657_v54, %v655_v52  ;;  %v680_v57 = vpack.c.bf16 %v658_v55, %v656_v53 }
 0x215   :  { %913 = vmatmul.bf16.gmra.mxu0 %v679_v56  ;;  %962 = vmatmul.bf16.gmra.mxu1 %v680_v57 }
 0x216   :  { %1011 = vmatmul.bf16.gmra.mxu2 %v679_v56  ;;  %1060 = vmatmul.bf16.gmra.mxu3 %v680_v57  ;;  %v575_v58 = vpop.f32.mrf.mxu2  ;;  %v624_v59 = vpop.f32.mrf.mxu3 }
 0x217   :  { %v576_v62 = vadd.f32 %v575_v58, %v2910_v41  ;;  %v625_v63 = vadd.f32 %v624_v59, %v2912_v11 }
 0x219   :  { %v659_v4 = vmax.f32 %v576_v62, 0.0  ;;  %v660_v5 = vmax.f32 %v625_v63, 0.0 }
 0x21e   :  { %v577_v0 = vpop.f32.mrf.mxu2  ;;  %v626_v1 = vpop.f32.mrf.mxu3 }
 0x21f   :  { %v578_v2 = vadd.f32 %v577_v0, %v2910_v41  ;;  %v627_v3 = vadd.f32 %v626_v1, %v2912_v11 }
 0x221   :  { %v661_v6 = vmax.f32 %v578_v2, 0.0  ;;  %v662_v7 = vmax.f32 %v627_v3, 0.0 }
 0x223   :  { %v681_v34 = vpack.c.bf16 %v661_v6, %v659_v4  ;;  %v682_v8 = vpack.c.bf16 %v662_v7, %v660_v5  ;;  %v2358_v6 = vld [vmem:[#allocation9 + $0x30] sm:$0xff] }
 0x224   :  { %1452 = vmatpush.bf16.msrb.mxu2 %v2358_v6 }
 0x225   :  { %918 = vmatmul.bf16.gmra.mxu0 %v681_v34  ;;  %967 = vmatmul.bf16.gmra.mxu1 %v682_v8 }
 0x226   :  { %1016 = vmatmul.bf16.gmra.mxu2 %v681_v34  ;;  %1065 = vmatmul.bf16.gmra.mxu3 %v682_v8  ;;  %v580_v9 = vpop.f32.mrf.mxu2  ;;  %v629_v10 = vpop.f32.mrf.mxu3 }
 0x227   :  { %v581_v14 = vadd.f32 %v580_v9, %v2910_v41  ;;  %v630_v15 = vadd.f32 %v629_v10, %v2912_v11 }
 0x229   :  { %v663_v20 = vmax.f32 %v581_v14, 0.0  ;;  %v664_v21 = vmax.f32 %v630_v15, 0.0 }
 0x22e   :  { %v582_v16 = vpop.f32.mrf.mxu2  ;;  %v631_v17 = vpop.f32.mrf.mxu3 }
 0x22f   :  { %v583_v18 = vadd.f32 %v582_v16, %v2910_v41  ;;  %v632_v19 = vadd.f32 %v631_v17, %v2912_v11 }
 0x231   :  { %v665_v22 = vmax.f32 %v583_v18, 0.0  ;;  %v666_v23 = vmax.f32 %v632_v19, 0.0 }
 0x233   :  { %v683_v24 = vpack.c.bf16 %v665_v22, %v663_v20  ;;  %v684_v25 = vpack.c.bf16 %v666_v23, %v664_v21 }
 0x235   :  { %923 = vmatmul.bf16.gmra.mxu0 %v683_v24  ;;  %972 = vmatmul.bf16.gmra.mxu1 %v684_v25 }
 0x236   :  { %1021 = vmatmul.bf16.gmra.mxu2 %v683_v24  ;;  %1070 = vmatmul.bf16.gmra.mxu3 %v684_v25  ;;  %v585_v26 = vpop.f32.mrf.mxu2  ;;  %v634_v27 = vpop.f32.mrf.mxu3 }
 0x237   :  { %v586_v29 = vadd.f32 %v585_v26, %v2910_v41  ;;  %v635_v30 = vadd.f32 %v634_v27, %v2912_v11 }
 0x239   :  { %v667_v37 = vmax.f32 %v586_v29, 0.0  ;;  %v668_v38 = vmax.f32 %v635_v30, 0.0  ;;  %v2357_v29 = vld [vmem:[#allocation9 + $0x28] sm:$0xff] }
 0x23a   :  { %1453 = vmatpush.bf16.msrb.mxu2 %v2357_v29 }
 0x23e   :  { %v587_v31 = vpop.f32.mrf.mxu2  ;;  %v636_v32 = vpop.f32.mrf.mxu3 }
 0x23f   :  { %v588_v35 = vadd.f32 %v587_v31, %v2910_v41  ;;  %v637_v36 = vadd.f32 %v636_v32, %v2912_v11  ;;  %v2949_v41 = vperm.slane %v719_v44, 0 }
 0x241   :  { %v669_v39 = vmax.f32 %v588_v35, 0.0  ;;  %v670_v40 = vmax.f32 %v637_v36, 0.0 }
 0x243   :  { %v685_v42 = vpack.c.bf16 %v669_v39, %v667_v37  ;;  %v686_v43 = vpack.c.bf16 %v670_v40, %v668_v38 }
 0x245   :  { %928 = vmatmul.bf16.gmra.mxu0 %v685_v42  ;;  %977 = vmatmul.bf16.gmra.mxu1 %v686_v43 }
 0x246   :  { %1026 = vmatmul.bf16.gmra.mxu2 %v685_v42  ;;  %1075 = vmatmul.bf16.gmra.mxu3 %v686_v43 }
 0x252   :  { %v894_v45 = vpop.f32.mrf.mxu0  ;;  %v943_v46 = vpop.f32.mrf.mxu1 }
 0x253   :  { %v895_v11 = vadd.f32 %v894_v45, %v2949_v41 }
 0x255   :  { %v944_v53 = vadd.f32 %v943_v46, %v895_v11 }
 0x257   :  { %v1081_v57 = vmax.f32 %v944_v53, 0.0 }
 0x259   :  { %v992_v48 = vpop.f32.mrf.mxu2  ;;  %v1041_v49 = vpop.f32.mrf.mxu3 }
 0x25a   :  { %v896_v51 = vpop.f32.mrf.mxu0  ;;  %v945_v52 = vpop.f32.mrf.mxu1  ;;  %v993_v56 = vadd.f32 %v992_v48, %v2952_v50 }
 0x25b   :  { %v897_v54 = vadd.f32 %v896_v51, %v2949_v41 }
 0x25c   :  { %v1042_v62 = vadd.f32 %v1041_v49, %v993_v56 }
 0x25d   :  { %v946_v55 = vadd.f32 %v945_v52, %v897_v54 }
 0x25e   :  { %v1082_v3 = vmax.f32 %v1042_v62, 0.0 }
 0x25f   :  { %v1083_v58 = vmax.f32 %v946_v55, 0.0  ;;  %v2356_v55 = vld [vmem:[#allocation9 + $0x20] sm:$0xff] }
 0x260   :  { %1454 = vmatpush.bf16.msrb.mxu2 %v2356_v55 }
 0x261   :  { %v1113_v59 = vpack.c.bf16 %v1083_v58, %v1081_v57  ;;  %v994_v60 = vpop.f32.mrf.mxu2  ;;  %v1043_v61 = vpop.f32.mrf.mxu3 }
 0x262   :  { %v995_v63 = vadd.f32 %v994_v60, %v2952_v50  ;;  %v899_v0 = vpop.f32.mrf.mxu0  ;;  %v948_v1 = vpop.f32.mrf.mxu1 }
 0x263   :  { %1269 = vmatmul.bf16.vlgmr.msra.gmra.mxu0 %v1113_v59  ;;  %v900_v5 = vadd.f32 %v899_v0, %v2949_v41 }
 0x264   :  { %v1044_v2 = vadd.f32 %v1043_v61, %v995_v63 }
 0x265   :  { %v949_v12 = vadd.f32 %v948_v1, %v900_v5 }
 0x266   :  { %v1084_v4 = vmax.f32 %v1044_v2, 0.0 }
 0x267   :  { %v1085_v16 = vmax.f32 %v949_v12, 0.0 }
 0x268   :  { %v1114_v7 = vpack.c.bf16 %v1084_v4, %v1082_v3 }
 0x269   :  { %v997_v34 = vpop.f32.mrf.mxu2  ;;  %v1046_v8 = vpop.f32.mrf.mxu3 }
 0x26a   :  { %1318 = vmatmul.bf16.vlgmr.msrb.gmra.mxu1 %v1114_v7  ;;  %v901_v9 = vpop.f32.mrf.mxu0  ;;  %v950_v10 = vpop.f32.mrf.mxu1  ;;  %v998_v15 = vadd.f32 %v997_v34, %v2952_v50 }
 0x26b   :  { %v902_v13 = vadd.f32 %v901_v9, %v2949_v41 }
 0x26c   :  { %v1047_v21 = vadd.f32 %v1046_v8, %v998_v15 }
 0x26d   :  { %v951_v14 = vadd.f32 %v950_v10, %v902_v13 }
 0x26e   :  { %v1086_v26 = vmax.f32 %v1047_v21, 0.0 }
 0x26f   :  { %v1087_v17 = vmax.f32 %v951_v14, 0.0  ;;  %v2355_v14 = vld [vmem:[#allocation9 + $0x18] sm:$0xff] }
 0x270   :  { %1455 = vmatpush.bf16.msrb.mxu2 %v2355_v14 }
 0x271   :  { %v999_v18 = vpop.f32.mrf.mxu2  ;;  %v1048_v19 = vpop.f32.mrf.mxu3  ;;  %v1115_v20 = vpack.c.bf16 %v1087_v17, %v1085_v16 }
 0x272   :  { %v1000_v22 = vadd.f32 %v999_v18, %v2952_v50  ;;  %v904_v23 = vpop.f32.mrf.mxu0  ;;  %v953_v24 = vpop.f32.mrf.mxu1 }
 0x273   :  { %1274 = vmatmul.bf16.gmra.mxu0 %v1115_v20  ;;  %v905_v28 = vadd.f32 %v904_v23, %v2949_v41 }
 0x274   :  { %v1049_v25 = vadd.f32 %v1048_v19, %v1000_v22 }
 0x275   :  { %v954_v36 = vadd.f32 %v953_v24, %v905_v28 }
 0x276   :  { %v1088_v27 = vmax.f32 %v1049_v25, 0.0 }
 0x277   :  { %v1089_v40 = vmax.f32 %v954_v36, 0.0 }
 0x278   :  { %v1116_v30 = vpack.c.bf16 %v1088_v27, %v1086_v26 }
 0x279   :  { %v1002_v31 = vpop.f32.mrf.mxu2  ;;  %v1051_v32 = vpop.f32.mrf.mxu3 }
 0x27a   :  { %1323 = vmatmul.bf16.gmra.mxu1 %v1116_v30  ;;  %v906_v33 = vpop.f32.mrf.mxu0  ;;  %v955_v35 = vpop.f32.mrf.mxu1  ;;  %v1003_v39 = vadd.f32 %v1002_v31, %v2952_v50 }
 0x27b   :  { %v907_v37 = vadd.f32 %v906_v33, %v2949_v41 }
 0x27c   :  { %v1052_v46 = vadd.f32 %v1051_v32, %v1003_v39 }
 0x27d   :  { %v956_v38 = vadd.f32 %v955_v35, %v907_v37 }
 0x27e   :  { %v1090_v51 = vmax.f32 %v1052_v46, 0.0 }
 0x27f   :  { %v1091_v42 = vmax.f32 %v956_v38, 0.0  ;;  %v2354_v38 = vld [vmem:[#allocation9 + $0x10] sm:$0xff] }
 0x280   :  { %1456 = vmatpush.bf16.msrb.mxu2 %v2354_v38 }
 0x281   :  { %v1004_v43 = vpop.f32.mrf.mxu2  ;;  %v1053_v44 = vpop.f32.mrf.mxu3  ;;  %v1117_v45 = vpack.c.bf16 %v1091_v42, %v1089_v40 }
 0x282   :  { %v1005_v11 = vadd.f32 %v1004_v43, %v2952_v50  ;;  %v909_v47 = vpop.f32.mrf.mxu0  ;;  %v958_v48 = vpop.f32.mrf.mxu1 }
 0x283   :  { %1279 = vmatmul.bf16.gmra.mxu0 %v1117_v45  ;;  %v910_v53 = vadd.f32 %v909_v47, %v2949_v41 }
 0x284   :  { %v1054_v49 = vadd.f32 %v1053_v44, %v1005_v11 }
 0x285   :  { %v959_v60 = vadd.f32 %v958_v48, %v910_v53 }
 0x286   :  { %v1092_v52 = vmax.f32 %v1054_v49, 0.0 }
 0x287   :  { %v1093_v0 = vmax.f32 %v959_v60, 0.0 }
 0x288   :  { %v1118_v54 = vpack.c.bf16 %v1092_v52, %v1090_v51 }
 0x289   :  { %v1007_v56 = vpop.f32.mrf.mxu2  ;;  %v1056_v57 = vpop.f32.mrf.mxu3 }
 0x28a   :  { %1328 = vmatmul.bf16.gmra.mxu1 %v1118_v54  ;;  %v911_v58 = vpop.f32.mrf.mxu0  ;;  %v960_v59 = vpop.f32.mrf.mxu1  ;;  %v1008_v63 = vadd.f32 %v1007_v56, %v2952_v50 }
 0x28b   :  { %v912_v61 = vadd.f32 %v911_v58, %v2949_v41 }
 0x28c   :  { %v1057_v5 = vadd.f32 %v1056_v57, %v1008_v63 }
 0x28d   :  { %v961_v62 = vadd.f32 %v960_v59, %v912_v61 }
 0x28e   :  { %v1094_v9 = vmax.f32 %v1057_v5, 0.0 }
 0x28f   :  { %v1095_v1 = vmax.f32 %v961_v62, 0.0  ;;  %v2353_v62 = vld [vmem:[#allocation9 + $0x8] sm:$0xff] }
 0x290   :  { %1457 = vmatpush.bf16.msrb.mxu2 %v2353_v62 }
 0x291   :  { %v1009_v2 = vpop.f32.mrf.mxu2  ;;  %v1058_v3 = vpop.f32.mrf.mxu3  ;;  %v1119_v4 = vpack.c.bf16 %v1095_v1, %v1093_v0 }
 0x292   :  { %v1010_v6 = vadd.f32 %v1009_v2, %v2952_v50  ;;  %v914_v7 = vpop.f32.mrf.mxu0  ;;  %v963_v34 = vpop.f32.mrf.mxu1 }
 0x293   :  { %1284 = vmatmul.bf16.gmra.mxu0 %v1119_v4  ;;  %v915_v12 = vadd.f32 %v914_v7, %v2949_v41 }
 0x294   :  { %v1059_v8 = vadd.f32 %v1058_v3, %v1010_v6 }
 0x295   :  { %v964_v19 = vadd.f32 %v963_v34, %v915_v12  ;;  %v2352_v12 = vld [vmem:[#allocation9] sm:$0xff] }
 0x296   :  { %v1096_v10 = vmax.f32 %v1059_v8, 0.0  ;;  %1458 = vmatpush.bf16.msrb.mxu2 %v2352_v12 }
 0x297   :  { %v1097_v23 = vmax.f32 %v964_v19, 0.0 }
 0x298   :  { %v1120_v13 = vpack.c.bf16 %v1096_v10, %v1094_v9 }
 0x299   :  { %v1012_v15 = vpop.f32.mrf.mxu2  ;;  %v1061_v16 = vpop.f32.mrf.mxu3 }
 0x29a   :  { %1333 = vmatmul.bf16.gmra.mxu1 %v1120_v13  ;;  %v916_v17 = vpop.f32.mrf.mxu0  ;;  %v965_v18 = vpop.f32.mrf.mxu1  ;;  %v1013_v22 = vadd.f32 %v1012_v15, %v2952_v50 }
 0x29b   :  { %v917_v20 = vadd.f32 %v916_v17, %v2949_v41 }
 0x29c   :  { %v1062_v28 = vadd.f32 %v1061_v16, %v1013_v22 }
 0x29d   :  { %v966_v21 = vadd.f32 %v965_v18, %v917_v20 }
 0x29e   :  { %v1098_v33 = vmax.f32 %v1062_v28, 0.0 }
 0x29f   :  { %v1099_v24 = vmax.f32 %v966_v21, 0.0 }
 0x2a1   :  { %v1121_v25 = vpack.c.bf16 %v1099_v24, %v1097_v23  ;;  %v1014_v26 = vpop.f32.mrf.mxu2  ;;  %v1063_v27 = vpop.f32.mrf.mxu3 }
 0x2a2   :  { %v1015_v29 = vadd.f32 %v1014_v26, %v2952_v50  ;;  %v919_v30 = vpop.f32.mrf.mxu0  ;;  %v968_v31 = vpop.f32.mrf.mxu1 }
 0x2a3   :  { %1289 = vmatmul.bf16.gmra.mxu0 %v1121_v25  ;;  %v920_v36 = vadd.f32 %v919_v30, %v2949_v41 }
 0x2a4   :  { %v1064_v32 = vadd.f32 %v1063_v27, %v1015_v29 }
 0x2a5   :  { %v969_v44 = vadd.f32 %v968_v31, %v920_v36 }
 0x2a6   :  { %v1100_v35 = vmax.f32 %v1064_v32, 0.0 }
 0x2a7   :  { %v1101_v47 = vmax.f32 %v969_v44, 0.0  ;;  %v2988_v44 = vld [vmem:[%s3100_s10] ss:$0 sm:$0xff] }
 0x2a8   :  { %v1122_v37 = vpack.c.bf16 %v1100_v35, %v1098_v33 }
 0x2a9   :  { %v1017_v39 = vpop.f32.mrf.mxu2  ;;  %v1066_v40 = vpop.f32.mrf.mxu3 }
 0x2aa   :  { %1338 = vmatmul.bf16.gmra.mxu1 %v1122_v37  ;;  %v921_v42 = vpop.f32.mrf.mxu0  ;;  %v970_v43 = vpop.f32.mrf.mxu1  ;;  %v1018_v11 = vadd.f32 %v1017_v39, %v2952_v50 }
 0x2ab   :  { %v922_v45 = vadd.f32 %v921_v42, %v2949_v41 }
 0x2ac   :  { %v1067_v53 = vadd.f32 %v1066_v40, %v1018_v11 }
 0x2ad   :  { %v971_v46 = vadd.f32 %v970_v43, %v922_v45 }
 0x2ae   :  { %v1102_v58 = vmax.f32 %v1067_v53, 0.0 }
 0x2af   :  { %v1103_v48 = vmax.f32 %v971_v46, 0.0  ;;  %v2367_v46 = vld [vmem:[#allocation10 + $0x38] sm:$0xff] }
 0x2b0   :  { %1592 = vmatpush.bf16.msrb.mxu3 %v2367_v46 }
 0x2b1   :  { %v1123_v49 = vpack.c.bf16 %v1103_v48, %v1101_v47  ;;  %v1019_v51 = vpop.f32.mrf.mxu2  ;;  %v1068_v52 = vpop.f32.mrf.mxu3 }
 0x2b2   :  { %v1020_v54 = vadd.f32 %v1019_v51, %v2952_v50  ;;  %v924_v55 = vpop.f32.mrf.mxu0  ;;  %v973_v56 = vpop.f32.mrf.mxu1 }
 0x2b3   :  { %1294 = vmatmul.bf16.gmra.mxu0 %v1123_v49  ;;  %v925_v60 = vadd.f32 %v924_v55, %v2949_v41 }
 0x2b4   :  { %v1069_v57 = vadd.f32 %v1068_v52, %v1020_v54 }
 0x2b5   :  { %v974_v3 = vadd.f32 %v973_v56, %v925_v60 }
 0x2b6   :  { %v1104_v59 = vmax.f32 %v1069_v57, 0.0  ;;  %v2366_v57 = vld [vmem:[#allocation10 + $0x30] sm:$0xff] }
 0x2b7   :  { %v1105_v7 = vmax.f32 %v974_v3, 0.0  ;;  %1593 = vmatpush.bf16.msrb.mxu3 %v2366_v57 }
 0x2b8   :  { %v1124_v61 = vpack.c.bf16 %v1104_v59, %v1102_v58 }
 0x2b9   :  { %v1022_v63 = vpop.f32.mrf.mxu2  ;;  %v1071_v0 = vpop.f32.mrf.mxu3 }
 0x2ba   :  { %1343 = vmatmul.bf16.gmra.mxu1 %v1124_v61  ;;  %v926_v1 = vpop.f32.mrf.mxu0  ;;  %v975_v2 = vpop.f32.mrf.mxu1  ;;  %v1023_v6 = vadd.f32 %v1022_v63, %v2952_v50 }
 0x2bb   :  { %v927_v4 = vadd.f32 %v926_v1, %v2949_v41 }
 0x2bc   :  { %v1072_v13 = vadd.f32 %v1071_v0, %v1023_v6 }
 0x2bd   :  { %v976_v5 = vadd.f32 %v975_v2, %v927_v4 }
 0x2be   :  { %v1106_v18 = vmax.f32 %v1072_v13, 0.0 }
 0x2bf   :  { %v1107_v34 = vmax.f32 %v976_v5, 0.0  ;;  %v2365_v5 = vld [vmem:[#allocation10 + $0x28] sm:$0xff] }
 0x2c0   :  { %1594 = vmatpush.bf16.msrb.mxu3 %v2365_v5 }
 0x2c1   :  { %v1125_v8 = vpack.c.bf16 %v1107_v34, %v1105_v7  ;;  %v1024_v9 = vpop.f32.mrf.mxu2  ;;  %v1073_v10 = vpop.f32.mrf.mxu3 }
 0x2c2   :  { %v1025_v14 = vadd.f32 %v1024_v9, %v2952_v50  ;;  %v929_v15 = vpop.f32.mrf.mxu0  ;;  %v978_v16 = vpop.f32.mrf.mxu1 }
 0x2c3   :  { %1299 = vmatmul.bf16.gmra.mxu0 %v1125_v8  ;;  %v930_v20 = vadd.f32 %v929_v15, %v2949_v41 }
 0x2c4   :  { %v1074_v17 = vadd.f32 %v1073_v10, %v1025_v14 }
 0x2c5   :  { %v979_v25 = vadd.f32 %v978_v16, %v930_v20 }
 0x2c6   :  { %v1108_v19 = vmax.f32 %v1074_v17, 0.0  ;;  %v2364_v17 = vld [vmem:[#allocation10 + $0x20] sm:$0xff] }
 0x2c7   :  { %v1109_v30 = vmax.f32 %v979_v25, 0.0  ;;  %1595 = vmatpush.bf16.msrb.mxu3 %v2364_v17 }
 0x2c8   :  { %v1126_v21 = vpack.c.bf16 %v1108_v19, %v1106_v18 }
 0x2c9   :  { %v1027_v22 = vpop.f32.mrf.mxu2  ;;  %v1076_v23 = vpop.f32.mrf.mxu3 }
 0x2ca   :  { %1348 = vmatmul.bf16.gmra.mxu1 %v1126_v21  ;;  %v931_v24 = vpop.f32.mrf.mxu0  ;;  %v980_v27 = vpop.f32.mrf.mxu1  ;;  %v1028_v29 = vadd.f32 %v1027_v22, %v2952_v50 }
 0x2cb   :  { %v932_v26 = vadd.f32 %v931_v24, %v2949_v41 }
 0x2cc   :  { %v1077_v35 = vadd.f32 %v1076_v23, %v1028_v29  ;;  %v2363_v29 = vld [vmem:[#allocation10 + $0x18] sm:$0xff] }
 0x2cd   :  { %v981_v28 = vadd.f32 %v980_v27, %v932_v26  ;;  %1596 = vmatpush.bf16.msrb.mxu3 %v2363_v29 }
 0x2ce   :  { %v1110_v39 = vmax.f32 %v1077_v35, 0.0 }
 0x2cf   :  { %v1111_v31 = vmax.f32 %v981_v28, 0.0 }
 0x2d1   :  { %v1127_v32 = vpack.c.bf16 %v1111_v31, %v1109_v30  ;;  %v1029_v33 = vpop.f32.mrf.mxu2  ;;  %v1078_v37 = vpop.f32.mrf.mxu3 }
 0x2d2   :  { %v1030_v36 = vadd.f32 %v1029_v33, %v2952_v50 }
 0x2d3   :  { %1304 = vmatmul.bf16.gmra.mxu0 %v1127_v32 }
 0x2d4   :  { %v1079_v38 = vadd.f32 %v1078_v37, %v1030_v36 }
 0x2d6   :  { %v1112_v40 = vmax.f32 %v1079_v38, 0.0 }
 0x2d8   :  { %v1128_v42 = vpack.c.bf16 %v1112_v40, %v1110_v39 }
 0x2da   :  { %1353 = vmatmul.bf16.gmra.mxu1 %v1128_v42 }
 0x2e0   :  { %v1270_v43 = vpop.f32.mrf.mxu0 }
 0x2e1   :  { %v1271_v11 = vadd.f32 %v2988_v44, %v1270_v43  ;;  %v2362_v43 = vld [vmem:[#allocation10 + $0x10] sm:$0xff] }
 0x2e2   :  { %1597 = vmatpush.bf16.msrb.mxu3 %v2362_v43 }
 0x2e7   :  { %v1319_v41 = vpop.f32.mrf.mxu1 }
 0x2e8   :  { %v1272_v45 = vpop.f32.mrf.mxu0  ;;  %v1320_v50 = vadd.f32 %v1319_v41, %v1271_v11 }
 0x2e9   :  { %v1273_v47 = vadd.f32 %v2988_v44, %v1272_v45 }
 0x2ea   :  { %v1359_v52 = vmax.f32 %v1320_v50, 0.0 }
 0x2ef   :  { %v1321_v48 = vpop.f32.mrf.mxu1 }
 0x2f0   :  { %v1322_v49 = vadd.f32 %v1321_v48, %v1273_v47  ;;  %v1275_v51 = vpop.f32.mrf.mxu0 }
 0x2f1   :  { %v1276_v58 = vadd.f32 %v2988_v44, %v1275_v51 }
 0x2f2   :  { %v1360_v53 = vmax.f32 %v1322_v49, 0.0 }
 0x2f4   :  { %v1375_v54 = vpack.c.bf16 %v1360_v53, %v1359_v52  ;;  %v2361_v52 = vld [vmem:[#allocation10 + $0x8] sm:$0xff] }
 0x2f5   :  { %1598 = vmatpush.bf16.msrb.mxu3 %v2361_v52 }
 0x2f6   :  { %1459 = vmatmul.bf16.vlgmr.msrb.gmra.mxu2 %v1375_v54 }
 0x2f7   :  { %v1324_v55 = vpop.f32.mrf.mxu1 }
 0x2f8   :  { %v1277_v56 = vpop.f32.mrf.mxu0  ;;  %v1325_v59 = vadd.f32 %v1324_v55, %v1276_v58  ;;  %v2360_v55 = vld [vmem:[#allocation10] sm:$0xff] }
 0x2f9   :  { %v1278_v60 = vadd.f32 %v2988_v44, %v1277_v56  ;;  %1599 = vmatpush.bf16.msrb.mxu3 %v2360_v55 }
 0x2fa   :  { %v1361_v0 = vmax.f32 %v1325_v59, 0.0 }
 0x2ff   :  { %v1326_v61 = vpop.f32.mrf.mxu1 }
 0x300   :  { %v1327_v62 = vadd.f32 %v1326_v61, %v1278_v60  ;;  %v1280_v63 = vpop.f32.mrf.mxu0 }
 0x301   :  { %v1281_v6 = vadd.f32 %v2988_v44, %v1280_v63 }
 0x302   :  { %v1362_v1 = vmax.f32 %v1327_v62, 0.0 }
 0x304   :  { %v1376_v2 = vpack.c.bf16 %v1362_v1, %v1361_v0 }
 0x306   :  { %1464 = vmatmul.bf16.gmra.mxu2 %v1376_v2 }
 0x307   :  { %v1329_v3 = vpop.f32.mrf.mxu1 }
 0x308   :  { %v1282_v4 = vpop.f32.mrf.mxu0  ;;  %v1330_v7 = vadd.f32 %v1329_v3, %v1281_v6 }
 0x309   :  { %v1283_v34 = vadd.f32 %v2988_v44, %v1282_v4 }
 0x30a   :  { %v1363_v12 = vmax.f32 %v1330_v7, 0.0 }
 0x30f   :  { %v1331_v8 = vpop.f32.mrf.mxu1 }
 0x310   :  { %v1332_v9 = vadd.f32 %v1331_v8, %v1283_v34  ;;  %v1285_v10 = vpop.f32.mrf.mxu0 }
 0x311   :  { %v1286_v18 = vadd.f32 %v2988_v44, %v1285_v10 }
 0x312   :  { %v1364_v13 = vmax.f32 %v1332_v9, 0.0 }
 0x314   :  { %v1377_v14 = vpack.c.bf16 %v1364_v13, %v1363_v12  ;;  %v3009_v12 = vld [vmem:[%s3102_s12] ss:$0 sm:$0xff] }
 0x315   :  { %v2375_v13 = vld [vmem:[#allocation12 + $0x38] sm:$0xff] }
 0x316   :  { %1469 = vmatmul.bf16.gmra.mxu2 %v1377_v14  ;;  %1733 = vmatpush.bf16.msrb.mxu0 %v2375_v13 }
 0x317   :  { %v1334_v15 = vpop.f32.mrf.mxu1 }
 0x318   :  { %v1287_v16 = vpop.f32.mrf.mxu0  ;;  %v1335_v19 = vadd.f32 %v1334_v15, %v1286_v18 }
 0x319   :  { %v1288_v20 = vadd.f32 %v2988_v44, %v1287_v16 }
 0x31a   :  { %v1365_v24 = vmax.f32 %v1335_v19, 0.0 }
 0x31f   :  { %v1336_v21 = vpop.f32.mrf.mxu1 }
 0x320   :  { %v1337_v22 = vadd.f32 %v1336_v21, %v1288_v20  ;;  %v1290_v23 = vpop.f32.mrf.mxu0  ;;  %v2374_v20 = vld [vmem:[#allocation12 + $0x30] sm:$0xff] }
 0x321   :  { %v1291_v30 = vadd.f32 %v2988_v44, %v1290_v23  ;;  %1734 = vmatpush.bf16.msrb.mxu0 %v2374_v20 }
 0x322   :  { %v1366_v25 = vmax.f32 %v1337_v22, 0.0 }
 0x324   :  { %v1378_v26 = vpack.c.bf16 %v1366_v25, %v1365_v24 }
 0x326   :  { %1474 = vmatmul.bf16.gmra.mxu2 %v1378_v26 }
 0x327   :  { %v1339_v27 = vpop.f32.mrf.mxu1 }
 0x328   :  { %v1292_v28 = vpop.f32.mrf.mxu0  ;;  %v1340_v31 = vadd.f32 %v1339_v27, %v1291_v30 }
 0x329   :  { %v1293_v32 = vadd.f32 %v2988_v44, %v1292_v28  ;;  %v2373_v28 = vld [vmem:[#allocation12 + $0x28] sm:$0xff] }
 0x32a   :  { %v1367_v37 = vmax.f32 %v1340_v31, 0.0  ;;  %1735 = vmatpush.bf16.msrb.mxu0 %v2373_v28 }
 0x32f   :  { %v1341_v33 = vpop.f32.mrf.mxu1 }
 0x330   :  { %v1342_v35 = vadd.f32 %v1341_v33, %v1293_v32  ;;  %v1295_v36 = vpop.f32.mrf.mxu0 }
 0x331   :  { %v1296_v41 = vadd.f32 %v2988_v44, %v1295_v36 }
 0x332   :  { %v1368_v38 = vmax.f32 %v1342_v35, 0.0 }
 0x334   :  { %v1379_v39 = vpack.c.bf16 %v1368_v38, %v1367_v37  ;;  %v2372_v37 = vld [vmem:[#allocation12 + $0x20] sm:$0xff] }
 0x335   :  { %1736 = vmatpush.bf16.msrb.mxu0 %v2372_v37 }
 0x336   :  { %1479 = vmatmul.bf16.gmra.mxu2 %v1379_v39 }
 0x337   :  { %v1344_v40 = vpop.f32.mrf.mxu1 }
 0x338   :  { %v1297_v42 = vpop.f32.mrf.mxu0  ;;  %v1345_v45 = vadd.f32 %v1344_v40, %v1296_v41 }
 0x339   :  { %v1298_v46 = vadd.f32 %v2988_v44, %v1297_v42 }
 0x33a   :  { %v1369_v48 = vmax.f32 %v1345_v45, 0.0 }
 0x33f   :  { %v1346_v11 = vpop.f32.mrf.mxu1 }
 0x340   :  { %v1347_v50 = vadd.f32 %v1346_v11, %v1298_v46  ;;  %v1300_v47 = vpop.f32.mrf.mxu0  ;;  %v2371_v46 = vld [vmem:[#allocation12 + $0x18] sm:$0xff] }
 0x341   :  { %v1301_v56 = vadd.f32 %v2988_v44, %v1300_v47  ;;  %1737 = vmatpush.bf16.msrb.mxu0 %v2371_v46 }
 0x342   :  { %v1370_v49 = vmax.f32 %v1347_v50, 0.0 }
 0x344   :  { %v1380_v51 = vpack.c.bf16 %v1370_v49, %v1369_v48 }
 0x346   :  { %1484 = vmatmul.bf16.gmra.mxu2 %v1380_v51 }
 0x347   :  { %v1349_v53 = vpop.f32.mrf.mxu1 }
 0x348   :  { %v1302_v54 = vpop.f32.mrf.mxu0  ;;  %v1350_v57 = vadd.f32 %v1349_v53, %v1301_v56  ;;  %v2370_v53 = vld [vmem:[#allocation12 + $0x10] sm:$0xff] }
 0x349   :  { %v1303_v58 = vadd.f32 %v2988_v44, %v1302_v54  ;;  %1738 = vmatpush.bf16.msrb.mxu0 %v2370_v53 }
 0x34a   :  { %v1371_v62 = vmax.f32 %v1350_v57, 0.0 }
 0x34f   :  { %v1351_v59 = vpop.f32.mrf.mxu1 }
 0x350   :  { %v1352_v60 = vadd.f32 %v1351_v59, %v1303_v58  ;;  %v1305_v61 = vpop.f32.mrf.mxu0 }
 0x351   :  { %v1306_v3 = vadd.f32 %v2988_v44, %v1305_v61 }
 0x352   :  { %v1372_v63 = vmax.f32 %v1352_v60, 0.0  ;;  %v2369_v60 = vld [vmem:[#allocation12 + $0x8] sm:$0xff] }
 0x353   :  { %1739 = vmatpush.bf16.msrb.mxu0 %v2369_v60 }
 0x354   :  { %v1381_v0 = vpack.c.bf16 %v1372_v63, %v1371_v62  ;;  %v2368_v62 = vld [vmem:[#allocation12] sm:$0xff] }
 0x356   :  { %1489 = vmatmul.bf16.gmra.mxu2 %v1381_v0 }
 0x357   :  { %v1354_v1 = vpop.f32.mrf.mxu1  ;;  %1740 = vmatpush.bf16.msrb.mxu0 %v2368_v62 }
 0x358   :  { %v1307_v2 = vpop.f32.mrf.mxu0  ;;  %v1355_v4 = vadd.f32 %v1354_v1, %v1306_v3 }
 0x359   :  { %v1308_v5 = vadd.f32 %v2988_v44, %v1307_v2 }
 0x35a   :  { %v1373_v34 = vmax.f32 %v1355_v4, 0.0 }
 0x35f   :  { %v1356_v6 = vpop.f32.mrf.mxu1 }
 0x360   :  { %v1357_v7 = vadd.f32 %v1356_v6, %v1308_v5 }
 0x362   :  { %v1374_v8 = vmax.f32 %v1357_v7, 0.0 }
 0x364   :  { %v1382_v9 = vpack.c.bf16 %v1374_v8, %v1373_v34 }
 0x366   :  { %1494 = vmatmul.bf16.gmra.mxu2 %v1382_v9 }
 0x379   :  { %v1460_v10 = vpop.f32.mrf.mxu2 }
 0x37a   :  { %v1461_v14 = vadd.f32 %v3009_v12, %v1460_v10 }
 0x37c   :  { %v1500_v44 = vmax.f32 %v1461_v14, 0.0  ;;  %v2394_v14 = vld [vmem:[%s3104_s14] ss:$0 sm:$0xff] }
 0x381   :  { %v1462_v15 = vpop.f32.mrf.mxu2 }
 0x382   :  { %v1463_v16 = vadd.f32 %v3009_v12, %v1462_v15 }
 0x384   :  { %v1501_v17 = vmax.f32 %v1463_v16, 0.0 }
 0x386   :  { %v1516_v18 = vpack.c.bf16 %v1501_v17, %v1500_v44 }
 0x388   :  { %1600 = vmatmul.bf16.vlgmr.msrb.gmra.mxu3 %v1516_v18 }
 0x389   :  { %v1465_v19 = vpop.f32.mrf.mxu2 }
 0x38a   :  { %v1466_v21 = vadd.f32 %v3009_v12, %v1465_v19 }
 0x38c   :  { %v1502_v24 = vmax.f32 %v1466_v21, 0.0 }
 0x391   :  { %v1467_v22 = vpop.f32.mrf.mxu2 }
 0x392   :  { %v1468_v23 = vadd.f32 %v3009_v12, %v1467_v22 }
 0x394   :  { %v1503_v25 = vmax.f32 %v1468_v23, 0.0 }
 0x396   :  { %v1517_v26 = vpack.c.bf16 %v1503_v25, %v1502_v24 }
 0x398   :  { %1605 = vmatmul.bf16.gmra.mxu3 %v1517_v26 }
 0x399   :  { %v1470_v27 = vpop.f32.mrf.mxu2 }
 0x39a   :  { %v1471_v29 = vadd.f32 %v3009_v12, %v1470_v27 }
 0x39c   :  { %v1504_v32 = vmax.f32 %v1471_v29, 0.0 }
 0x3a1   :  { %v1472_v30 = vpop.f32.mrf.mxu2 }
 0x3a2   :  { %v1473_v31 = vadd.f32 %v3009_v12, %v1472_v30 }
 0x3a4   :  { %v1505_v33 = vmax.f32 %v1473_v31, 0.0 }
 0x3a6   :  { %v1518_v35 = vpack.c.bf16 %v1505_v33, %v1504_v32 }
 0x3a8   :  { %1610 = vmatmul.bf16.gmra.mxu3 %v1518_v35 }
 0x3a9   :  { %v1475_v36 = vpop.f32.mrf.mxu2 }
 0x3aa   :  { %v1476_v38 = vadd.f32 %v3009_v12, %v1475_v36 }
 0x3ac   :  { %v1506_v42 = vmax.f32 %v1476_v38, 0.0 }
 0x3b1   :  { %v1477_v39 = vpop.f32.mrf.mxu2 }
 0x3b2   :  { %v1478_v40 = vadd.f32 %v3009_v12, %v1477_v39 }
 0x3b4   :  { %v1507_v43 = vmax.f32 %v1478_v40, 0.0 }
 0x3b6   :  { %v1519_v41 = vpack.c.bf16 %v1507_v43, %v1506_v42 }
 0x3b8   :  { %1615 = vmatmul.bf16.gmra.mxu3 %v1519_v41 }
 0x3b9   :  { %v1480_v45 = vpop.f32.mrf.mxu2 }
 0x3ba   :  { %v1481_v11 = vadd.f32 %v3009_v12, %v1480_v45 }
 0x3bc   :  { %v1508_v48 = vmax.f32 %v1481_v11, 0.0 }
 0x3c1   :  { %v1482_v50 = vpop.f32.mrf.mxu2 }
 0x3c2   :  { %v1483_v47 = vadd.f32 %v3009_v12, %v1482_v50 }
 0x3c4   :  { %v1509_v49 = vmax.f32 %v1483_v47, 0.0 }
 0x3c6   :  { %v1520_v51 = vpack.c.bf16 %v1509_v49, %v1508_v48 }
 0x3c8   :  { %1620 = vmatmul.bf16.gmra.mxu3 %v1520_v51 }
 0x3c9   :  { %v1485_v52 = vpop.f32.mrf.mxu2 }
 0x3ca   :  { %v1486_v54 = vadd.f32 %v3009_v12, %v1485_v52 }
 0x3cc   :  { %v1510_v57 = vmax.f32 %v1486_v54, 0.0 }
 0x3d1   :  { %v1487_v55 = vpop.f32.mrf.mxu2 }
 0x3d2   :  { %v1488_v56 = vadd.f32 %v3009_v12, %v1487_v55 }
 0x3d4   :  { %v1511_v58 = vmax.f32 %v1488_v56, 0.0 }
 0x3d6   :  { %v1521_v59 = vpack.c.bf16 %v1511_v58, %v1510_v57 }
 0x3d8   :  { %1625 = vmatmul.bf16.gmra.mxu3 %v1521_v59 }
 0x3d9   :  { %v1490_v61 = vpop.f32.mrf.mxu2 }
 0x3da   :  { %v1491_v63 = vadd.f32 %v3009_v12, %v1490_v61 }
 0x3dc   :  { %v1512_v2 = vmax.f32 %v1491_v63, 0.0 }
 0x3e1   :  { %v1492_v0 = vpop.f32.mrf.mxu2 }
 0x3e2   :  { %v1493_v1 = vadd.f32 %v3009_v12, %v1492_v0 }
 0x3e4   :  { %v1513_v3 = vmax.f32 %v1493_v1, 0.0 }
 0x3e6   :  { %v1522_v4 = vpack.c.bf16 %v1513_v3, %v1512_v2 }
 0x3e8   :  { %1630 = vmatmul.bf16.gmra.mxu3 %v1522_v4 }
 0x3e9   :  { %v1495_v5 = vpop.f32.mrf.mxu2 }
 0x3ea   :  { %v1496_v6 = vadd.f32 %v3009_v12, %v1495_v5  ;;  %v1782_v5 = vlaneseq }
 0x3ec   :  { %v1514_v8 = vmax.f32 %v1496_v6, 0.0 }
 0x3f1   :  { %v1497_v7 = vpop.f32.mrf.mxu2 }
 0x3f2   :  { %v1498_v34 = vadd.f32 %v3009_v12, %v1497_v7  ;;  %v3030_v7 = vshrl.u32 %v1782_v5, 7 }
 0x3f4   :  { %v1515_v9 = vmax.f32 %v1498_v34, 0.0  ;;  %v3035_v34 = vld [vmem:[%s3106_s16] ss:$0 sm:$0xff] }
 0x3f6   :  { %v1523_v10 = vpack.c.bf16 %v1515_v9, %v1514_v8  ;;  %v3037_v8 = vand.u32 127, %v1782_v5  ;;  %v1784_v9 = vadd.s32 8, %v3030_v7 }
 0x3f8   :  { %1635 = vmatmul.bf16.gmra.mxu3 %v1523_v10  ;;  %vm1801_vm1 = vcmp.eq.s32.totalorder %v3030_v7, %v3037_v8  ;;  %vm1802_vm2 = vcmp.eq.s32.totalorder %v1784_v9, %v3037_v8 }
 0x40b   :  { %v1601_v13 = vpop.f32.mrf.mxu3 }
 0x40c   :  { %v1602_v15 = vadd.f32 %v2394_v14, %v1601_v13 }
 0x40e   :  { %v1641_v17 = vmax.f32 %v1602_v15, 0.0 }
 0x413   :  { %v1603_v16 = vpop.f32.mrf.mxu3 }
 0x414   :  { %v1604_v44 = vadd.f32 %v2394_v14, %v1603_v16 }
 0x416   :  { %v1642_v18 = vmax.f32 %v1604_v44, 0.0 }
 0x418   :  { %v1657_v19 = vpack.c.bf16 %v1642_v18, %v1641_v17  ;;  %v1785_v17 = vadd.s32 16, %v3030_v7 }
 0x41a   :  { %1741 = vmatmul.bf16.vlgmr.msrb.gmra.mxu0 %v1657_v19  ;;  %vm1803_vm3 = vcmp.eq.s32.totalorder %v1785_v17, %v3037_v8 }
 0x41b   :  { %v1606_v20 = vpop.f32.mrf.mxu3 }
 0x41c   :  { %v1607_v21 = vadd.f32 %v2394_v14, %v1606_v20 }
 0x41e   :  { %v1643_v23 = vmax.f32 %v1607_v21, 0.0 }
 0x423   :  { %v1608_v22 = vpop.f32.mrf.mxu3 }
 0x424   :  { %v1609_v12 = vadd.f32 %v2394_v14, %v1608_v22  ;;  %v1786_v22 = vadd.s32 24, %v3030_v7 }
 0x426   :  { %v1644_v24 = vmax.f32 %v1609_v12, 0.0  ;;  %vm1804_vm4 = vcmp.eq.s32.totalorder %v1786_v22, %v3037_v8 }
 0x428   :  { %v1658_v25 = vpack.c.bf16 %v1644_v24, %v1643_v23 }
 0x42a   :  { %1746 = vmatmul.bf16.gmra.mxu0 %v1658_v25 }
 0x42b   :  { %v1611_v26 = vpop.f32.mrf.mxu3 }
 0x42c   :  { %v1612_v27 = vadd.f32 %v2394_v14, %v1611_v26  ;;  %v1787_v26 = vadd.s32 32, %v3030_v7 }
 0x42e   :  { %v1645_v30 = vmax.f32 %v1612_v27, 0.0  ;;  %vm1805_vm5 = vcmp.eq.s32.totalorder %v1787_v26, %v3037_v8 }
 0x433   :  { %v1613_v28 = vpop.f32.mrf.mxu3 }
 0x434   :  { %v1614_v29 = vadd.f32 %v2394_v14, %v1613_v28 }
 0x436   :  { %v1646_v31 = vmax.f32 %v1614_v29, 0.0 }
 0x438   :  { %v1659_v32 = vpack.c.bf16 %v1646_v31, %v1645_v30 }
 0x43a   :  { %1751 = vmatmul.bf16.gmra.mxu0 %v1659_v32 }
 0x43b   :  { %v1616_v33 = vpop.f32.mrf.mxu3 }
 0x43c   :  { %v1617_v35 = vadd.f32 %v2394_v14, %v1616_v33 }
 0x43e   :  { %v1647_v38 = vmax.f32 %v1617_v35, 0.0 }
 0x443   :  { %v1618_v36 = vpop.f32.mrf.mxu3 }
 0x444   :  { %v1619_v37 = vadd.f32 %v2394_v14, %v1618_v36 }
 0x446   :  { %v1648_v39 = vmax.f32 %v1619_v37, 0.0 }
 0x448   :  { %v1660_v40 = vpack.c.bf16 %v1648_v39, %v1647_v38  ;;  %v1788_v39 = vadd.s32 40, %v3030_v7 }
 0x44a   :  { %1756 = vmatmul.bf16.gmra.mxu0 %v1660_v40  ;;  %v1789_v40 = vadd.s32 48, %v3030_v7  ;;  %vm1806_vm6 = vcmp.eq.s32.totalorder %v1788_v39, %v3037_v8 }
 0x44b   :  { %v1621_v42 = vpop.f32.mrf.mxu3 }
 0x44c   :  { %v1622_v43 = vadd.f32 %v2394_v14, %v1621_v42  ;;  %vm1807_vm7 = vcmp.eq.s32.totalorder %v1789_v40, %v3037_v8 }
 0x44e   :  { %v1649_v46 = vmax.f32 %v1622_v43, 0.0 }
 0x453   :  { %v1623_v41 = vpop.f32.mrf.mxu3 }
 0x454   :  { %v1624_v45 = vadd.f32 %v2394_v14, %v1623_v41  ;;  %v1790_v41 = vadd.s32 56, %v3030_v7 }
 0x456   :  { %v1650_v11 = vmax.f32 %v1624_v45, 0.0  ;;  %vm1808_vm8 = vcmp.eq.s32.totalorder %v1790_v41, %v3037_v8 }
 0x458   :  { %v1661_v50 = vpack.c.bf16 %v1650_v11, %v1649_v46  ;;  %v1791_v46 = vadd.s32 64, %v3030_v7 }
 0x45a   :  { %1761 = vmatmul.bf16.gmra.mxu0 %v1661_v50  ;;  %vm1809_vm9 = vcmp.eq.s32.totalorder %v1791_v46, %v3037_v8 }
 0x45b   :  { %v1626_v47 = vpop.f32.mrf.mxu3 }
 0x45c   :  { %v1627_v48 = vadd.f32 %v2394_v14, %v1626_v47  ;;  %v1792_v47 = vadd.s32 72, %v3030_v7 }
 0x45e   :  { %v1651_v52 = vmax.f32 %v1627_v48, 0.0  ;;  %vm1810_vm10 = vcmp.eq.s32.totalorder %v1792_v47, %v3037_v8 }
 0x463   :  { %v1628_v49 = vpop.f32.mrf.mxu3 }
 0x464   :  { %v1629_v51 = vadd.f32 %v2394_v14, %v1628_v49 }
 0x466   :  { %v1652_v53 = vmax.f32 %v1629_v51, 0.0 }
 0x468   :  { %v1662_v54 = vpack.c.bf16 %v1652_v53, %v1651_v52  ;;  %v1793_v52 = vadd.s32 80, %v3030_v7 }
 0x46a   :  { %1766 = vmatmul.bf16.gmra.mxu0 %v1662_v54  ;;  %vm1811_vm11 = vcmp.eq.s32.totalorder %v1793_v52, %v3037_v8 }
 0x46b   :  { %v1631_v55 = vpop.f32.mrf.mxu3 }
 0x46c   :  { %v1632_v56 = vadd.f32 %v2394_v14, %v1631_v55 }
 0x46e   :  { %v1653_v59 = vmax.f32 %v1632_v56, 0.0 }
 0x473   :  { %v1633_v57 = vpop.f32.mrf.mxu3 }
 0x474   :  { %v1634_v58 = vadd.f32 %v2394_v14, %v1633_v57  ;;  %v1794_v57 = vadd.s32 88, %v3030_v7 }
 0x476   :  { %v1654_v60 = vmax.f32 %v1634_v58, 0.0  ;;  %vm1812_vm12 = vcmp.eq.s32.totalorder %v1794_v57, %v3037_v8 }
 0x478   :  { %v1663_v61 = vpack.c.bf16 %v1654_v60, %v1653_v59 }
 0x47a   :  { %1771 = vmatmul.bf16.gmra.mxu0 %v1663_v61  ;;  %v1795_v61 = vadd.s32 96, %v3030_v7 }
 0x47b   :  { %v1636_v62 = vpop.f32.mrf.mxu3 }
 0x47c   :  { %v1637_v63 = vadd.f32 %v2394_v14, %v1636_v62  ;;  %vm1813_vm13 = vcmp.eq.s32.totalorder %v1795_v61, %v3037_v8 }
 0x47e   :  { %v1655_v2 = vmax.f32 %v1637_v63, 0.0 }
 0x483   :  { %v1638_v0 = vpop.f32.mrf.mxu3 }
 0x484   :  { %v1639_v1 = vadd.f32 %v2394_v14, %v1638_v0 }
 0x486   :  { %v1656_v3 = vmax.f32 %v1639_v1, 0.0  ;;  %v1796_v1 = vadd.s32 104, %v3030_v7 }
 0x488   :  { %v1664_v4 = vpack.c.bf16 %v1656_v3, %v1655_v2  ;;  %vm1814_vm14 = vcmp.eq.s32.totalorder %v1796_v1, %v3037_v8 }
 0x48a   :  { %1776 = vmatmul.bf16.gmra.mxu0 %v1664_v4 }
 0x497   :  { %v1742_v6 = vpop.f32.mrf.mxu0 }
 0x498   :  { %v1743_v10 = vadd.f32 %v3035_v34, %v1742_v6  ;;  %v1797_v6 = vadd.s32 112, %v3030_v7 }
 0x49a   :  { %v1817_v15 = vsel %vm1801_vm1, %v1743_v10, 0.0  ;;  %vm1815_vm15 = vcmp.eq.s32.totalorder %v1797_v6, %v3037_v8 }
 0x49f   :  { %v1744_v13 = vpop.f32.mrf.mxu0 }
 0x4a0   :  { %v1745_v14 = vadd.f32 %v3035_v34, %v1744_v13 }
 0x4a2   :  { %v1818_v16 = vsel %vm1802_vm2, %v1745_v14, 0.0 }
 0x4a3   :  { %v1833_v44 = vadd.f32 %v1818_v16, %v1817_v15 }
 0x4a7   :  { %v1747_v18 = vpop.f32.mrf.mxu0 }
 0x4a8   :  { %v1748_v19 = vadd.f32 %v3035_v34, %v1747_v18 }
 0x4aa   :  { %v1819_v20 = vsel %vm1803_vm3, %v1748_v19, 0.0 }
 0x4ab   :  { %v1834_v21 = vadd.f32 %v1833_v44, %v1819_v20  ;;  %v1798_v44 = vadd.s32 120, %v3030_v7 }
 0x4ad   :  { %vm1816_vm0 = vcmp.eq.s32.totalorder %v1798_v44, %v3037_v8 }
 0x4af   :  { %v1749_v12 = vpop.f32.mrf.mxu0 }
 0x4b0   :  { %v1750_v23 = vadd.f32 %v3035_v34, %v1749_v12 }
 0x4b2   :  { %v1820_v24 = vsel %vm1804_vm4, %v1750_v23, 0.0 }
 0x4b3   :  { %v1835_v25 = vadd.f32 %v1834_v21, %v1820_v24 }
 0x4b7   :  { %v1752_v27 = vpop.f32.mrf.mxu0 }
 0x4b8   :  { %v1753_v28 = vadd.f32 %v3035_v34, %v1752_v27 }
 0x4ba   :  { %v1821_v29 = vsel %vm1805_vm5, %v1753_v28, 0.0 }
 0x4bb   :  { %v1836_v30 = vadd.f32 %v1835_v25, %v1821_v29 }
 0x4bf   :  { %v1754_v31 = vpop.f32.mrf.mxu0 }
 0x4c0   :  { %v1755_v43 = vadd.f32 %v3035_v34, %v1754_v31 }
 0x4c2   :  { %v1822_v11 = vsel %vm1806_vm6, %v1755_v43, 0.0 }
 0x4c3   :  { %v1837_v51 = vadd.f32 %v1836_v30, %v1822_v11 }
 0x4c7   :  { %v1757_v32 = vpop.f32.mrf.mxu0 }
 0x4c8   :  { %v1758_v45 = vadd.f32 %v3035_v34, %v1757_v32 }
 0x4ca   :  { %v1823_v48 = vsel %vm1807_vm7, %v1758_v45, 0.0 }
 0x4cb   :  { %v1838_v56 = vadd.f32 %v1837_v51, %v1823_v48 }
 0x4cf   :  { %v1759_v33 = vpop.f32.mrf.mxu0 }
 0x4d0   :  { %v1760_v50 = vadd.f32 %v3035_v34, %v1759_v33 }
 0x4d2   :  { %v1824_v54 = vsel %vm1808_vm8, %v1760_v50, 0.0 }
 0x4d3   :  { %v1839_v60 = vadd.f32 %v1838_v56, %v1824_v54 }
 0x4d7   :  { %v1762_v35 = vpop.f32.mrf.mxu0 }
 0x4d8   :  { %v1763_v49 = vadd.f32 %v3035_v34, %v1762_v35 }
 0x4da   :  { %v1825_v58 = vsel %vm1809_vm9, %v1763_v49, 0.0 }
 0x4db   :  { %v1840_v0 = vadd.f32 %v1839_v60, %v1825_v58 }
 0x4df   :  { %v1764_v36 = vpop.f32.mrf.mxu0 }
 0x4e0   :  { %v1765_v55 = vadd.f32 %v3035_v34, %v1764_v36 }
 0x4e2   :  { %v1826_v62 = vsel %vm1810_vm10, %v1765_v55, 0.0 }
 0x4e3   :  { %v1841_v4 = vadd.f32 %v1840_v0, %v1826_v62 }
 0x4e7   :  { %v1767_v37 = vpop.f32.mrf.mxu0 }
 0x4e8   :  { %v1768_v59 = vadd.f32 %v3035_v34, %v1767_v37 }
 0x4ea   :  { %v1827_v2 = vsel %vm1811_vm11, %v1768_v59, 0.0 }
 0x4eb   :  { %v1842_v13 = vadd.f32 %v1841_v4, %v1827_v2 }
 0x4ef   :  { %v1769_v38 = vpop.f32.mrf.mxu0 }
 0x4f0   :  { %v1770_v63 = vadd.f32 %v3035_v34, %v1769_v38 }
 0x4f2   :  { %v1828_v9 = vsel %vm1812_vm12, %v1770_v63, 0.0 }
 0x4f3   :  { %v1843_v16 = vadd.f32 %v1842_v13, %v1828_v9 }
 0x4f7   :  { %v1772_v42 = vpop.f32.mrf.mxu0 }
 0x4f8   :  { %v1773_v3 = vadd.f32 %v3035_v34, %v1772_v42 }
 0x4fa   :  { %v1829_v14 = vsel %vm1813_vm13, %v1773_v3, 0.0 }
 0x4fb   :  { %v1844_v18 = vadd.f32 %v1843_v16, %v1829_v14 }
 0x4ff   :  { %v1774_v53 = vpop.f32.mrf.mxu0 }
 0x500   :  { %v1775_v10 = vadd.f32 %v3035_v34, %v1774_v53 }
 0x502   :  { %v1830_v17 = vsel %vm1814_vm14, %v1775_v10, 0.0 }
 0x503   :  { %v1845_v20 = vadd.f32 %v1844_v18, %v1830_v17 }
 0x507   :  { %v1777_v5 = vpop.f32.mrf.mxu0 }
 0x508   :  { %v1778_v15 = vadd.f32 %v3035_v34, %v1777_v5 }
 0x50a   :  { %v1831_v19 = vsel %vm1815_vm15, %v1778_v15, 0.0 }
 0x50b   :  { %v1846_v12 = vadd.f32 %v1845_v20, %v1831_v19 }
 0x50f   :  { %v1779_v21 = vpop.f32.mrf.mxu0 }
 0x510   :  { %v1780_v22 = vadd.f32 %v3035_v34, %v1779_v21 }
 0x512   :  { %v1832_v23 = vsel %vm1816_vm0, %v1780_v22, 0.0 }
 0x513   :  { %v1847_v24 = vadd.f32 %v1846_v12, %v1832_v23 }
 0x515   :  { %v1848_v25 = vrot.slane %v1847_v24, 4 }
 0x517   :  { %v1849_v26 = vadd.f32 %v1848_v25, %v1847_v24 }
 0x519   :  { %v1850_v27 = vrot.slane %v1849_v26, 2 }
 0x51b   :  { %v1851_v28 = vadd.f32 %v1850_v27, %v1849_v26 }
 0x51d   :  { %v1852_v29 = vrot.slane %v1851_v28, 1 }
 0x51f   :  { %v1853_v30 = vadd.f32 %v1852_v29, %v1851_v28 }
 0x521   :  { %v2278_v31 = vmul.f32 -1.442695, %v1853_v30 }
 0x523   :  { %2396 = vpow2.f32 %v2278_v31 }
 0x529   :  { %v2397_v7 = vpop.eup %2396 }
 0x52a   :  { %v1857_v32 = vadd.f32 1.0, %v2397_v7 }
 0x52c   :  { %2398 = vrcp.f32 %v1857_v32  ;;  %v1869_v8 = vand.u32 2147483648, %v1857_v32  ;;  %v1867_v34 = vand.u32 2147483647, %v1857_v32  ;;  %vm1863_vm2 = vweird.f32 %v1857_v32 }
 0x52e   :  { %v1870_v39 = vor.u32 1.1754944e-38, %v1869_v8  ;;  %vm1868_vm4 = vcmp.eq.f32.partialorder %v1867_v34, 8.507059e+37 }
 0x532   :  { %v2399_v33 = vpop.eup %2398 }
 0x533   :  { %v1859_v35 = vmul.f32 %v2399_v33, %v1857_v32  ;;  %vm1864_vm1 = vweird.f32 %v2399_v33 }
 0x534   :  { %vm1865_vm3 = vmor %vm1863_vm2, %vm1864_vm1 }
 0x535   :  { %v1860_v36 = vsub.f32 1.0, %v1859_v35 }
 0x537   :  { %v1861_v37 = vmul.f32 %v2399_v33, %v1860_v36 }
 0x539   :  { %v1862_v38 = vadd.f32 %v2399_v33, %v1861_v37 }
 0x53b   :  { %v1866_v40 = vsel %vm1865_vm3, %v2399_v33, %v1862_v38 }
 0x53c   :  { %v1871_v42 = vsel %vm1868_vm4, %v1870_v39, %v1866_v40 }
 0x53d   :  { %1873 = vst [vmem:[%s3107_s17] sm:$0x1] %v1871_v42 }
 0x53e   :  { %1878 = vsyncpa [#allocation3], 1 }
 0x53f   :  { %1879 = vsyncpa [#allocation5], 1 }
 0x540   :  { %1880 = vsyncpa [#allocation8], 1 }
 0x541   :  { %1881 = vsyncpa [#allocation11], 1 }

</bundles_post_ra>
